<compile_context>
chip_gen: v5e
topology: v5e:2x2
jax: 0.10.0
libtpu: 0.0.40
codegen_flags: <defaults>
</compile_context>

<pallas_src>
import functools
import math

import jax
import jax.numpy as jnp
from jax.experimental import pallas as pl
from jax.experimental.pallas import tpu as pltpu

# ---------------- model hyper-params (small, consistent with the module) ----
B = 2        # batch
S = 8        # sequence length
D = 32       # d_model (hidden)
H = 4        # num heads
DH = D // H  # head dim
DFF = 64     # feed-forward dim
EPS = 1e-5
BH = B * H
BS = B * S


# --------------------------- Pallas kernel ----------------------------------
def _layernorm(y, gamma, beta):
    mu = jnp.mean(y, axis=-1, keepdims=True)
    var = jnp.mean((y - mu) * (y - mu), axis=-1, keepdims=True)
    return (y - mu) * jax.lax.rsqrt(var + EPS) * gamma + beta


def encoder_kernel(x_ref,
                   wq_ref, bq_ref, wk_ref, bk_ref, wv_ref, bv_ref,
                   wo_ref, bo_ref, g1_ref, bt1_ref,
                   w1_ref, b1_ref, w2_ref, b2_ref, g2_ref, bt2_ref,
                   o_ref):
    """Fused encoder layer for the whole (tiny) batch in one grid-less invocation."""
    x2d = x_ref[...]                                        # (B*S, D)

    # Head-major replicated view of the activations: (B*H, S, D).
    # (major-dim reshapes/broadcast only -- no lane/sublane relayout.)
    x3 = x2d.reshape(B, S, D)
    xb = jnp.broadcast_to(x3[:, None], (B, H, S, D)).reshape(BH, S, D)

    # QKV projections: leading-batch 3-D contractions, head axis stays off lanes.
    q = jnp.einsum('nsd,nde->nse', xb, wq_ref[...],
                   preferred_element_type=jnp.float32) + bq_ref[...]
    k = jnp.einsum('nsd,nde->nse', xb, wk_ref[...],
                   preferred_element_type=jnp.float32) + bk_ref[...]
    v = jnp.einsum('nsd,nde->nse', xb, wv_ref[...],
                   preferred_element_type=jnp.float32) + bv_ref[...]

    # Scaled dot-product attention for all (batch, head) pairs at once.
    s = jnp.einsum('nqd,nkd->nqk', q, k,
                   preferred_element_type=jnp.float32) * (1.0 / math.sqrt(DH))
    s = s - jnp.max(s, axis=-1, keepdims=True)
    p = jnp.exp(s)
    p = p * pl.reciprocal(jnp.sum(p, axis=-1, keepdims=True), approx=False)
    ctx = jnp.einsum('nqk,nkd->nqd', p, v,
                     preferred_element_type=jnp.float32)    # (B*H, S, DH)

    # Per-head output projection, then merge heads via a major-axis sum
    # (replaces lane-dim concatenate).
    proj = jnp.einsum('nsd,nde->nse', ctx, wo_ref[...],
                      preferred_element_type=jnp.float32)   # (B*H, S, D)
    attn = jnp.sum(proj.reshape(B, H, S, D), axis=1).reshape(BS, D) + bo_ref[...]

    y = _layernorm(x2d + attn, g1_ref[...], bt1_ref[...])   # (B*S, D)

    # Feed-forward on the folded (B*S, D) rows (16-row MXU occupancy).
    h1 = jnp.dot(y, w1_ref[...], preferred_element_type=jnp.float32) + b1_ref[...]
    h1 = jnp.maximum(h1, 0.0)
    f = jnp.dot(h1, w2_ref[...], preferred_element_type=jnp.float32) + b2_ref[...]
    z = _layernorm(y + f, g2_ref[...], bt2_ref[...])

    o_ref[...] = z.astype(o_ref.dtype)


# --------------------------- wrapper -----------------------------------------
def _head_major_in_proj(w, b):
    """(D, D)/(1, D) column-blocked-by-head -> (B*H, D, DH) / (B*H, 1, DH)."""
    w_h = w.reshape(D, H, DH).transpose(1, 0, 2)            # (H, D, DH)
    b_h = b.reshape(H, 1, DH)                               # (H, 1, DH)
    return jnp.tile(w_h, (B, 1, 1)), jnp.tile(b_h, (B, 1, 1))


@jax.jit
def custom_encoder_layer(x, attn_params, ff_params):
    """CustomEncoderLayer.forward: x -> self_attn_pipeline -> ff_pipeline (fused)."""
    wq, bq, wk, bk, wv, bv, wo, bo, g1, bt1 = attn_params
    w1, b1, w2, b2, g2, bt2 = ff_params

    # Head-major weight repacking (tiny, done once by XLA outside the kernel).
    wq_bh, bq_bh = _head_major_in_proj(wq, bq)
    wk_bh, bk_bh = _head_major_in_proj(wk, bk)
    wv_bh, bv_bh = _head_major_in_proj(wv, bv)
    wo_bh = jnp.tile(wo.reshape(H, DH, D), (B, 1, 1))       # (B*H, DH, D)

    x2d = x.reshape(BS, D)
    vmem_spec = functools.partial(pl.BlockSpec, memory_space=pltpu.MemorySpace.VMEM)
    n_inputs = 17
    out2d = pl.pallas_call(
        encoder_kernel,
        out_shape=jax.ShapeDtypeStruct((BS, D), jnp.float32),
        in_specs=[vmem_spec() for _ in range(n_inputs)],
        out_specs=vmem_spec(),
    )(x2d, wq_bh, bq_bh, wk_bh, bk_bh, wv_bh, bv_bh, wo_bh, bo, g1, bt1,
      w1, b1, w2, b2, g2, bt2)
    return out2d.reshape(B, S, D)


# --------------------------- reference (pure JAX) ----------------------------
def _ref(x, attn_params, ff_params):
    wq, bq, wk, bk, wv, bv, wo, bo, g1, bt1 = attn_params
    q = x @ wq + bq
    k = x @ wk + bk
    v = x @ wv + bv
    qh = q.reshape(B, S, H, DH).transpose(0, 2, 1, 3)
    kh = k.reshape(B, S, H, DH).transpose(0, 2, 1, 3)
    vh = v.reshape(B, S, H, DH).transpose(0, 2, 1, 3)
    s = jnp.einsum("bhqd,bhkd->bhqk", qh, kh) / math.sqrt(DH)
    p = jax.nn.softmax(s, axis=-1)
    a = jnp.einsum("bhqk,bhkd->bhqd", p, vh).transpose(0, 2, 1, 3).reshape(B, S, D)
    y = x + (a @ wo + bo)
    mu = y.mean(-1, keepdims=True)
    var = ((y - mu) ** 2).mean(-1, keepdims=True)
    y = (y - mu) / jnp.sqrt(var + EPS) * g1 + bt1

    w1, b1, w2, b2, g2, bt2 = ff_params
    f = jnp.maximum(y @ w1 + b1, 0.0) @ w2 + b2
    z = y + f
    mu = z.mean(-1, keepdims=True)
    var = ((z - mu) ** 2).mean(-1, keepdims=True)
    return (z - mu) / jnp.sqrt(var + EPS) * g2 + bt2


# --------------------------- main --------------------------------------------
if __name__ == "__main__":
    key = jax.random.PRNGKey(0)
    ks = jax.random.split(key, 16)

    def init(k, shape, scale):
        return scale * jax.random.normal(k, shape, dtype=jnp.float32)

    sc = 1.0 / math.sqrt(D)
    attn_params = (
        init(ks[0], (D, D), sc), init(ks[1], (1, D), 0.0),   # Wq, bq
        init(ks[2], (D, D), sc), init(ks[3], (1, D), 0.0),   # Wk, bk
        init(ks[4], (D, D), sc), init(ks[5], (1, D), 0.0),   # Wv, bv
        init(ks[6], (D, D), sc), init(ks[7], (1, D), 0.0),   # Wo, bo
        jnp.ones((1, D), jnp.float32), jnp.zeros((1, D), jnp.float32),  # LN1 gamma/beta
    )
    ff_params = (
        init(ks[8], (D, DFF), sc), init(ks[9], (1, DFF), 0.01),                    # W1, b1
        init(ks[10], (DFF, D), 1.0 / math.sqrt(DFF)), init(ks[11], (1, D), 0.01),  # W2, b2
        jnp.ones((1, D), jnp.float32), jnp.zeros((1, D), jnp.float32),             # LN2 gamma/beta
    )

    x = jax.random.normal(ks[12], (B, S, D), dtype=jnp.float32)

    out = custom_encoder_layer(x, attn_params, ff_params)
    out = jax.block_until_ready(out)

    ref = _ref(x, attn_params, ff_params)
    assert out.shape == (B, S, D)
    assert jnp.allclose(out, ref, atol=1e-4, rtol=1e-4), "mismatch vs pure-JAX reference"

    print("KERNEL_OK")
</pallas_src>

<mosaic_0001>
module attributes {stable_mosaic.version = 11 : i64} {
  func.func @encoder_kernel(%arg0: memref<16x32xf32, #tpu.memory_space<vmem>>, %arg1: memref<8x32x8xf32, #tpu.memory_space<vmem>>, %arg2: memref<8x1x8xf32, #tpu.memory_space<vmem>>, %arg3: memref<8x32x8xf32, #tpu.memory_space<vmem>>, %arg4: memref<8x1x8xf32, #tpu.memory_space<vmem>>, %arg5: memref<8x32x8xf32, #tpu.memory_space<vmem>>, %arg6: memref<8x1x8xf32, #tpu.memory_space<vmem>>, %arg7: memref<8x8x32xf32, #tpu.memory_space<vmem>>, %arg8: memref<1x32xf32, #tpu.memory_space<vmem>>, %arg9: memref<1x32xf32, #tpu.memory_space<vmem>>, %arg10: memref<1x32xf32, #tpu.memory_space<vmem>>, %arg11: memref<32x64xf32, #tpu.memory_space<vmem>>, %arg12: memref<1x64xf32, #tpu.memory_space<vmem>>, %arg13: memref<64x32xf32, #tpu.memory_space<vmem>>, %arg14: memref<1x32xf32, #tpu.memory_space<vmem>>, %arg15: memref<1x32xf32, #tpu.memory_space<vmem>>, %arg16: memref<1x32xf32, #tpu.memory_space<vmem>>, %arg17: memref<16x32xf32, #tpu.memory_space<vmem>>) attributes {dimension_semantics = [], scalar_prefetch = 0 : i64, scratch_operands = 0 : i64, tpu.core_type = #tpu.core_type<tc>} {
    %c0 = arith.constant 0 : index
    %c0_0 = arith.constant 0 : index
    %0 = vector.load %arg0[%c0, %c0_0] : memref<16x32xf32, #tpu.memory_space<vmem>>, vector<16x32xf32>
    %1 = vector.shape_cast %0 : vector<16x32xf32> to vector<2x8x32xf32>
    %2 = vector.shape_cast %1 : vector<2x8x32xf32> to vector<2x1x8x32xf32>
    %3 = vector.shape_cast %2 : vector<2x1x8x32xf32> to vector<2x1x8x32xf32>
    %4 = vector.broadcast %3 : vector<2x1x8x32xf32> to vector<2x4x8x32xf32>
    %5 = vector.shape_cast %4 : vector<2x4x8x32xf32> to vector<8x8x32xf32>
    %c0_1 = arith.constant 0 : index
    %c0_2 = arith.constant 0 : index
    %c0_3 = arith.constant 0 : index
    %6 = vector.load %arg1[%c0_1, %c0_2, %c0_3] : memref<8x32x8xf32, #tpu.memory_space<vmem>>, vector<8x32x8xf32>
    "tpu.trace_start"() <{level = 10 : i32, message = "nsd,nde->nse"}> : () -> ()
    %cst = arith.constant dense<0.000000e+00> : vector<8x8x8xf32>
    %7 = tpu.matmul %5, %6, %cst {dimension_numbers = #tpu.dot_dimension_numbers<[2], [1], [1], [2], [0, 0, 0, 1, 1, 2], [0], [0]>} : vector<8x8x32xf32>, vector<8x32x8xf32>, vector<8x8x8xf32> -> vector<8x8x8xf32>
    "tpu.trace_stop"() : () -> ()
    %c0_4 = arith.constant 0 : index
    %c0_5 = arith.constant 0 : index
    %c0_6 = arith.constant 0 : index
    %8 = vector.load %arg2[%c0_4, %c0_5, %c0_6] : memref<8x1x8xf32, #tpu.memory_space<vmem>>, vector<8x1x8xf32>
    %9 = vector.broadcast %8 : vector<8x1x8xf32> to vector<8x8x8xf32>
    %10 = arith.addf %7, %9 : vector<8x8x8xf32>
    %c0_7 = arith.constant 0 : index
    %c0_8 = arith.constant 0 : index
    %c0_9 = arith.constant 0 : index
    %11 = vector.load %arg3[%c0_7, %c0_8, %c0_9] : memref<8x32x8xf32, #tpu.memory_space<vmem>>, vector<8x32x8xf32>
    "tpu.trace_start"() <{level = 10 : i32, message = "nsd,nde->nse"}> : () -> ()
    %cst_10 = arith.constant dense<0.000000e+00> : vector<8x8x8xf32>
    %12 = tpu.matmul %5, %11, %cst_10 {dimension_numbers = #tpu.dot_dimension_numbers<[2], [1], [1], [2], [0, 0, 0, 1, 1, 2], [0], [0]>} : vector<8x8x32xf32>, vector<8x32x8xf32>, vector<8x8x8xf32> -> vector<8x8x8xf32>
    "tpu.trace_stop"() : () -> ()
    %c0_11 = arith.constant 0 : index
    %c0_12 = arith.constant 0 : index
    %c0_13 = arith.constant 0 : index
    %13 = vector.load %arg4[%c0_11, %c0_12, %c0_13] : memref<8x1x8xf32, #tpu.memory_space<vmem>>, vector<8x1x8xf32>
    %14 = vector.broadcast %13 : vector<8x1x8xf32> to vector<8x8x8xf32>
    %15 = arith.addf %12, %14 : vector<8x8x8xf32>
    %c0_14 = arith.constant 0 : index
    %c0_15 = arith.constant 0 : index
    %c0_16 = arith.constant 0 : index
    %16 = vector.load %arg5[%c0_14, %c0_15, %c0_16] : memref<8x32x8xf32, #tpu.memory_space<vmem>>, vector<8x32x8xf32>
    "tpu.trace_start"() <{level = 10 : i32, message = "nsd,nde->nse"}> : () -> ()
    %cst_17 = arith.constant dense<0.000000e+00> : vector<8x8x8xf32>
    %17 = tpu.matmul %5, %16, %cst_17 {dimension_numbers = #tpu.dot_dimension_numbers<[2], [1], [1], [2], [0, 0, 0, 1, 1, 2], [0], [0]>} : vector<8x8x32xf32>, vector<8x32x8xf32>, vector<8x8x8xf32> -> vector<8x8x8xf32>
    "tpu.trace_stop"() : () -> ()
    %c0_18 = arith.constant 0 : index
    %c0_19 = arith.constant 0 : index
    %c0_20 = arith.constant 0 : index
    %18 = vector.load %arg6[%c0_18, %c0_19, %c0_20] : memref<8x1x8xf32, #tpu.memory_space<vmem>>, vector<8x1x8xf32>
    %19 = vector.broadcast %18 : vector<8x1x8xf32> to vector<8x8x8xf32>
    %20 = arith.addf %17, %19 : vector<8x8x8xf32>
    "tpu.trace_start"() <{level = 10 : i32, message = "nqd,nkd->nqk"}> : () -> ()
    %cst_21 = arith.constant dense<0.000000e+00> : vector<8x8x8xf32>
    %21 = tpu.matmul %10, %15, %cst_21 {dimension_numbers = #tpu.dot_dimension_numbers<[2], [2], [1], [1], [0, 0, 0, 1, 1, 1], [0], [0]>} : vector<8x8x8xf32>, vector<8x8x8xf32>, vector<8x8x8xf32> -> vector<8x8x8xf32>
    "tpu.trace_stop"() : () -> ()
    %cst_22 = arith.constant 0.353553385 : f32
    %22 = vector.broadcast %cst_22 : f32 to vector<8x8x8xf32>
    %23 = arith.mulf %21, %22 : vector<8x8x8xf32>
    %cst_23 = arith.constant dense<0xFF800000> : vector<8x8xf32>
    %24 = vector.multi_reduction <maximumf>, %23, %cst_23 [2] : vector<8x8x8xf32> to vector<8x8xf32>
    %25 = vector.shape_cast %24 : vector<8x8xf32> to vector<8x8x1xf32>
    %26 = vector.broadcast %25 : vector<8x8x1xf32> to vector<8x8x8xf32>
    %27 = arith.subf %23, %26 : vector<8x8x8xf32>
    %28 = math.exp %27 : vector<8x8x8xf32>
    %cst_24 = arith.constant dense<0.000000e+00> : vector<8x8xf32>
    %29 = vector.multi_reduction <add>, %28, %cst_24 [2] : vector<8x8x8xf32> to vector<8x8xf32>
    %30 = vector.shape_cast %29 : vector<8x8xf32> to vector<8x8x1xf32>
    %31 = tpu.reciprocal %30 : vector<8x8x1xf32> -> vector<8x8x1xf32>
    %32 = vector.broadcast %31 : vector<8x8x1xf32> to vector<8x8x8xf32>
    %33 = arith.mulf %28, %32 : vector<8x8x8xf32>
    "tpu.trace_start"() <{level = 10 : i32, message = "nqk,nkd->nqd"}> : () -> ()
    %cst_25 = arith.constant dense<0.000000e+00> : vector<8x8x8xf32>
    %34 = tpu.matmul %33, %20, %cst_25 {dimension_numbers = #tpu.dot_dimension_numbers<[2], [1], [1], [2], [0, 0, 0, 1, 1, 2], [0], [0]>} : vector<8x8x8xf32>, vector<8x8x8xf32>, vector<8x8x8xf32> -> vector<8x8x8xf32>
    "tpu.trace_stop"() : () -> ()
    %c0_26 = arith.constant 0 : index
    %c0_27 = arith.constant 0 : index
    %c0_28 = arith.constant 0 : index
    %35 = vector.load %arg7[%c0_26, %c0_27, %c0_28] : memref<8x8x32xf32, #tpu.memory_space<vmem>>, vector<8x8x32xf32>
    "tpu.trace_start"() <{level = 10 : i32, message = "nsd,nde->nse"}> : () -> ()
    %cst_29 = arith.constant dense<0.000000e+00> : vector<8x8x32xf32>
    %36 = tpu.matmul %34, %35, %cst_29 {dimension_numbers = #tpu.dot_dimension_numbers<[2], [1], [1], [2], [0, 0, 0, 1, 1, 2], [0], [0]>} : vector<8x8x8xf32>, vector<8x8x32xf32>, vector<8x8x32xf32> -> vector<8x8x32xf32>
    "tpu.trace_stop"() : () -> ()
    %37 = vector.shape_cast %36 : vector<8x8x32xf32> to vector<2x4x8x32xf32>
    %cst_30 = arith.constant dense<0.000000e+00> : vector<2x8x32xf32>
    %38 = vector.multi_reduction <add>, %37, %cst_30 [1] : vector<2x4x8x32xf32> to vector<2x8x32xf32>
    %39 = vector.shape_cast %38 : vector<2x8x32xf32> to vector<16x32xf32>
    %c0_31 = arith.constant 0 : index
    %c0_32 = arith.constant 0 : index
    %40 = vector.load %arg8[%c0_31, %c0_32] : memref<1x32xf32, #tpu.memory_space<vmem>>, vector<1x32xf32>
    %41 = vector.broadcast %40 : vector<1x32xf32> to vector<16x32xf32>
    %42 = arith.addf %39, %41 : vector<16x32xf32>
    %43 = arith.addf %0, %42 : vector<16x32xf32>
    %c0_33 = arith.constant 0 : index
    %c0_34 = arith.constant 0 : index
    %44 = vector.load %arg9[%c0_33, %c0_34] : memref<1x32xf32, #tpu.memory_space<vmem>>, vector<1x32xf32>
    %c0_35 = arith.constant 0 : index
    %c0_36 = arith.constant 0 : index
    %45 = vector.load %arg10[%c0_35, %c0_36] : memref<1x32xf32, #tpu.memory_space<vmem>>, vector<1x32xf32>
    %cst_37 = arith.constant dense<0.000000e+00> : vector<16xf32>
    %46 = vector.multi_reduction <add>, %43, %cst_37 [1] : vector<16x32xf32> to vector<16xf32>
    %47 = vector.shape_cast %46 : vector<16xf32> to vector<16x1xf32>
    %cst_38 = arith.constant 3.200000e+01 : f32
    %48 = vector.broadcast %cst_38 : f32 to vector<16x1xf32>
    %49 = arith.divf %47, %48 : vector<16x1xf32>
    %50 = vector.broadcast %49 : vector<16x1xf32> to vector<16x32xf32>
    %51 = arith.subf %43, %50 : vector<16x32xf32>
    %52 = vector.broadcast %49 : vector<16x1xf32> to vector<16x32xf32>
    %53 = arith.subf %43, %52 : vector<16x32xf32>
    %54 = arith.mulf %51, %53 : vector<16x32xf32>
    %cst_39 = arith.constant dense<0.000000e+00> : vector<16xf32>
    %55 = vector.multi_reduction <add>, %54, %cst_39 [1] : vector<16x32xf32> to vector<16xf32>
    %56 = vector.shape_cast %55 : vector<16xf32> to vector<16x1xf32>
    %cst_40 = arith.constant 3.200000e+01 : f32
    %57 = vector.broadcast %cst_40 : f32 to vector<16x1xf32>
    %58 = arith.divf %56, %57 : vector<16x1xf32>
    %59 = vector.broadcast %49 : vector<16x1xf32> to vector<16x32xf32>
    %60 = arith.subf %43, %59 : vector<16x32xf32>
    %cst_41 = arith.constant 9.99999974E-6 : f32
    %61 = vector.broadcast %cst_41 : f32 to vector<16x1xf32>
    %62 = arith.addf %58, %61 : vector<16x1xf32>
    %63 = math.rsqrt %62 : vector<16x1xf32>
    %64 = vector.broadcast %63 : vector<16x1xf32> to vector<16x32xf32>
    %65 = arith.mulf %60, %64 : vector<16x32xf32>
    %66 = vector.broadcast %44 : vector<1x32xf32> to vector<16x32xf32>
    %67 = arith.mulf %65, %66 : vector<16x32xf32>
    %68 = vector.broadcast %45 : vector<1x32xf32> to vector<16x32xf32>
    %69 = arith.addf %67, %68 : vector<16x32xf32>
    %c0_42 = arith.constant 0 : index
    %c0_43 = arith.constant 0 : index
    %70 = vector.load %arg11[%c0_42, %c0_43] : memref<32x64xf32, #tpu.memory_space<vmem>>, vector<32x64xf32>
    %cst_44 = arith.constant dense<0.000000e+00> : vector<16x64xf32>
    %71 = tpu.matmul %69, %70, %cst_44 {dimension_numbers = #tpu.dot_dimension_numbers<[1], [0], [0], [1], [0, 0, 1, 1], [], []>} : vector<16x32xf32>, vector<32x64xf32>, vector<16x64xf32> -> vector<16x64xf32>
    %c0_45 = arith.constant 0 : index
    %c0_46 = arith.constant 0 : index
    %72 = vector.load %arg12[%c0_45, %c0_46] : memref<1x64xf32, #tpu.memory_space<vmem>>, vector<1x64xf32>
    %73 = vector.broadcast %72 : vector<1x64xf32> to vector<16x64xf32>
    %74 = arith.addf %71, %73 : vector<16x64xf32>
    %cst_47 = arith.constant 0.000000e+00 : f32
    %75 = vector.broadcast %cst_47 : f32 to vector<16x64xf32>
    %76 = arith.maximumf %74, %75 : vector<16x64xf32>
    %c0_48 = arith.constant 0 : index
    %c0_49 = arith.constant 0 : index
    %77 = vector.load %arg13[%c0_48, %c0_49] : memref<64x32xf32, #tpu.memory_space<vmem>>, vector<64x32xf32>
    %cst_50 = arith.constant dense<0.000000e+00> : vector<16x32xf32>
    %78 = tpu.matmul %76, %77, %cst_50 {dimension_numbers = #tpu.dot_dimension_numbers<[1], [0], [0], [1], [0, 0, 1, 1], [], []>} : vector<16x64xf32>, vector<64x32xf32>, vector<16x32xf32> -> vector<16x32xf32>
    %c0_51 = arith.constant 0 : index
    %c0_52 = arith.constant 0 : index
    %79 = vector.load %arg14[%c0_51, %c0_52] : memref<1x32xf32, #tpu.memory_space<vmem>>, vector<1x32xf32>
    %80 = vector.broadcast %79 : vector<1x32xf32> to vector<16x32xf32>
    %81 = arith.addf %78, %80 : vector<16x32xf32>
    %82 = arith.addf %69, %81 : vector<16x32xf32>
    %c0_53 = arith.constant 0 : index
    %c0_54 = arith.constant 0 : index
    %83 = vector.load %arg15[%c0_53, %c0_54] : memref<1x32xf32, #tpu.memory_space<vmem>>, vector<1x32xf32>
    %c0_55 = arith.constant 0 : index
    %c0_56 = arith.constant 0 : index
    %84 = vector.load %arg16[%c0_55, %c0_56] : memref<1x32xf32, #tpu.memory_space<vmem>>, vector<1x32xf32>
    %cst_57 = arith.constant dense<0.000000e+00> : vector<16xf32>
    %85 = vector.multi_reduction <add>, %82, %cst_57 [1] : vector<16x32xf32> to vector<16xf32>
    %86 = vector.shape_cast %85 : vector<16xf32> to vector<16x1xf32>
    %cst_58 = arith.constant 3.200000e+01 : f32
    %87 = vector.broadcast %cst_58 : f32 to vector<16x1xf32>
    %88 = arith.divf %86, %87 : vector<16x1xf32>
    %89 = vector.broadcast %88 : vector<16x1xf32> to vector<16x32xf32>
    %90 = arith.subf %82, %89 : vector<16x32xf32>
    %91 = vector.broadcast %88 : vector<16x1xf32> to vector<16x32xf32>
    %92 = arith.subf %82, %91 : vector<16x32xf32>
    %93 = arith.mulf %90, %92 : vector<16x32xf32>
    %cst_59 = arith.constant dense<0.000000e+00> : vector<16xf32>
    %94 = vector.multi_reduction <add>, %93, %cst_59 [1] : vector<16x32xf32> to vector<16xf32>
    %95 = vector.shape_cast %94 : vector<16xf32> to vector<16x1xf32>
    %cst_60 = arith.constant 3.200000e+01 : f32
    %96 = vector.broadcast %cst_60 : f32 to vector<16x1xf32>
    %97 = arith.divf %95, %96 : vector<16x1xf32>
    %98 = vector.broadcast %88 : vector<16x1xf32> to vector<16x32xf32>
    %99 = arith.subf %82, %98 : vector<16x32xf32>
    %cst_61 = arith.constant 9.99999974E-6 : f32
    %100 = vector.broadcast %cst_61 : f32 to vector<16x1xf32>
    %101 = arith.addf %97, %100 : vector<16x1xf32>
    %102 = math.rsqrt %101 : vector<16x1xf32>
    %103 = vector.broadcast %102 : vector<16x1xf32> to vector<16x32xf32>
    %104 = arith.mulf %99, %103 : vector<16x32xf32>
    %105 = vector.broadcast %83 : vector<1x32xf32> to vector<16x32xf32>
    %106 = arith.mulf %104, %105 : vector<16x32xf32>
    %107 = vector.broadcast %84 : vector<1x32xf32> to vector<16x32xf32>
    %108 = arith.addf %106, %107 : vector<16x32xf32>
    %c0_62 = arith.constant 0 : index
    %c0_63 = arith.constant 0 : index
    %109 = vector.load %arg17[%c0_62, %c0_63] : memref<16x32xf32, #tpu.memory_space<vmem>>, vector<16x32xf32>
    tpu.vector_store %arg17[%c0_62, %c0_63], %108 {strides = array<i32>} : memref<16x32xf32, #tpu.memory_space<vmem>>, vector<16x32xf32>,
    return
  }
}

</mosaic_0001>

<bundles_post_ra>
// kernel: custom_encoder_layer.1
= control target key start
LH: loop header
LB: loop body
LE: loop exit
PB: predicated region body
PF: predicated region fallthrough
CT: control target
= control target key end

     0   :  { %s2738_s0 = inlined_call_operand.vmem [shape: f32[16,32], index: 0, kind: input, shape index: {}]   ;;  %s2739_s1 = inlined_call_operand.vmem [shape: f32[8,32,8], index: 1, kind: input, shape index: {}]   ;;  %s2740_s2 = inlined_call_operand.vmem [shape: f32[8,1,8], index: 2, kind: input, shape index: {}]   ;;  %s2741_s3 = inlined_call_operand.vmem [shape: f32[8,32,8], index: 3, kind: input, shape index: {}]   ;;  %s2742_s4 = inlined_call_operand.vmem [shape: f32[8,1,8], index: 4, kind: input, shape index: {}]   ;;  %s2743_s5 = inlined_call_operand.vmem [shape: f32[8,32,8], index: 5, kind: input, shape index: {}]   ;;  %s2744_s6 = inlined_call_operand.vmem [shape: f32[8,1,8], index: 6, kind: input, shape index: {}]   ;;  %s2745_s7 = inlined_call_operand.vmem [shape: f32[8,8,32], index: 7, kind: input, shape index: {}]   ;;  %s2746_s8 = inlined_call_operand.vmem [shape: f32[1,32], index: 8, kind: input, shape index: {}]   ;;  %s2747_s9 = inlined_call_operand.vmem [shape: f32[1,32], index: 9, kind: input, shape index: {}]   ;;  %s2748_s10 = inlined_call_operand.vmem [shape: f32[1,32], index: 10, kind: input, shape index: {}]   ;;  %s2749_s11 = inlined_call_operand.vmem [shape: f32[32,64], index: 11, kind: input, shape index: {}]   ;;  %s2750_s12 = inlined_call_operand.vmem [shape: f32[1,64], index: 12, kind: input, shape index: {}]   ;;  %s2751_s13 = inlined_call_operand.vmem [shape: f32[64,32], index: 13, kind: input, shape index: {}]   ;;  %s2752_s14 = inlined_call_operand.vmem [shape: f32[1,32], index: 14, kind: input, shape index: {}]   ;;  %s2753_s15 = inlined_call_operand.vmem [shape: f32[1,32], index: 15, kind: input, shape index: {}]   ;;  %s2754_s16 = inlined_call_operand.vmem [shape: f32[1,32], index: 16, kind: input, shape index: {}]   ;;  %s2755_s17 = inlined_call_operand.hbm [shape: f32[16,32], index: 17, kind: output, shape index: {}]  }
   0x1   :  { %2758 = sst [smem:[#allocation5_spill]] %s2738_s0 }
   0x2   :  { %2759 = sst [smem:[#allocation6_spill]] %s2739_s1 }
   0x3   :  { %s2760_s26 = sld [smem:[#allocation6_spill]]  ;;  %vm123_vm0 = vcmask 261120   ;;  %v297_v19 = vld [vmem:[%s2741_s3 + $0x38] sm:$0xff]  ;;  %v296_v23 = vld [vmem:[%s2741_s3 + $0x30] sm:$0xff]  ;;  %v295_v27 = vld [vmem:[%s2741_s3 + $0x28] sm:$0xff] }
   0x4   :  { %s2761_s27 = sld [smem:[#allocation5_spill]]  ;;  %v293_v24 = vld [vmem:[%s2741_s3 + $0x18] sm:$0xff]  ;;  %v292_v28 = vld [vmem:[%s2741_s3 + $0x10] sm:$0xff]  ;;  %v294_v31 = vld [vmem:[%s2741_s3 + $0x20] sm:$0xff] }
   0x5   :  { %v291_v32 = vld [vmem:[%s2741_s3 + $0x8] sm:$0xff]  ;;  %v290_v35 = vld [vmem:[%s2741_s3] sm:$0xff]  ;;  %v313_v38 = vld [vmem:[%s2741_s3 + $0xb8] sm:$0xff] }
   0x6   :  { %v309_v40 = vld [vmem:[%s2741_s3 + $0x98] sm:$0xff]  ;;  %v312_v43 = vld [vmem:[%s2741_s3 + $0xb0] sm:$0xff]  ;;  %v311_v48 = vld [vmem:[%s2741_s3 + $0xa8] sm:$0xff] }
   0x7   :  { %v301_v45 = vld [vmem:[%s2741_s3 + $0x58] sm:$0xff]  ;;  %v308_v46 = vld [vmem:[%s2741_s3 + $0x90] sm:$0xff]  ;;  %v307_v50 = vld [vmem:[%s2741_s3 + $0x88] sm:$0xff] }
   0x8   :  { %v305_v47 = vld [vmem:[%s2741_s3 + $0x78] sm:$0xff]  ;;  %v300_v49 = vld [vmem:[%s2741_s3 + $0x50] sm:$0xff]  ;;  %v310_v52 = vld [vmem:[%s2741_s3 + $0xa0] sm:$0xff] }
   0x9   :  { %v62_v0 = vld [vmem:[%s2760_s26 + $0x18] sm:$0xff]  ;;  %v61_v3 = vld [vmem:[%s2760_s26 + $0x10] sm:$0xff]  ;;  %v60_v7 = vld [vmem:[%s2760_s26 + $0x8] sm:$0xff] }
   0xa   :  { %v66_v1 = vld [vmem:[%s2760_s26 + $0x38] sm:$0xff]  ;;  %139 = vmatpush.msra.mxu3 %v62_v0  ;;  %v65_v4 = vld [vmem:[%s2760_s26 + $0x30] sm:$0xff]  ;;  %v64_v8 = vld [vmem:[%s2760_s26 + $0x28] sm:$0xff] }
   0xb   :  { %v82_v2 = vld [vmem:[%s2760_s26 + $0xb8] sm:$0xff]  ;;  %159 = vmatpush.msra.mxu2 %v66_v1  ;;  %v81_v5 = vld [vmem:[%s2760_s26 + $0xb0] sm:$0xff]  ;;  %v80_v9 = vld [vmem:[%s2760_s26 + $0xa8] sm:$0xff] }
   0xc   :  { %242 = vmatpush.msra.mxu1 %v82_v2  ;;  %v78_v6 = vld [vmem:[%s2760_s26 + $0x98] sm:$0xff]  ;;  %140 = vmatpush.msra.mxu3 %v61_v3  ;;  %v77_v10 = vld [vmem:[%s2760_s26 + $0x90] sm:$0xff]  ;;  %v59_v11 = vld [vmem:[%s2760_s26] sm:$0xff] }
   0xd   :  { %160 = vmatpush.msra.mxu2 %v65_v4  ;;  %222 = vmatpush.msra.mxu0 %v78_v6  ;;  %v63_v12 = vld [vmem:[%s2760_s26 + $0x20] sm:$0xff]  ;;  %v76_v15 = vld [vmem:[%s2760_s26 + $0x88] sm:$0xff]  ;;  %v70_v17 = vld [vmem:[%s2760_s26 + $0x58] sm:$0xff] }
   0xe   :  { %243 = vmatpush.msra.mxu1 %v81_v5  ;;  %141 = vmatpush.msra.mxu3 %v60_v7  ;;  %v79_v13 = vld [vmem:[%s2760_s26 + $0xa0] sm:$0xff]  ;;  %v2079_v16 = vld [vmem:[%s2761_s27 + $0x8] sm:$0xff]  ;;  %v74_v18 = vld [vmem:[%s2760_s26 + $0x78] sm:$0xff] }
   0xf   :  { %161 = vmatpush.msra.mxu2 %v64_v8  ;;  %v2071_v14 = vld [vmem:[%s2761_s27] sm:$0xff]  ;;  %223 = vmatpush.msra.mxu0 %v77_v10  ;;  %v69_v21 = vld [vmem:[%s2760_s26 + $0x50] sm:$0xff]  ;;  %v68_v25 = vld [vmem:[%s2760_s26 + $0x48] sm:$0xff] }
  0x10   :  { %244 = vmatpush.msra.mxu1 %v80_v9  ;;  %142 = vmatpush.msra.mxu3 %v59_v11  ;;  %v75_v20 = vld [vmem:[%s2760_s26 + $0x80] sm:$0xff]  ;;  %v73_v22 = vld [vmem:[%s2760_s26 + $0x70] sm:$0xff]  ;;  %v72_v26 = vld [vmem:[%s2760_s26 + $0x68] sm:$0xff] }
  0x11   :  { %162 = vmatpush.msra.mxu2 %v63_v12  ;;  %1767 = vmatmul.msk.f32.vlgmr.msra.gmra.mxu3 %vm123_vm0, %v2071_v14  ;;  %v67_v29 = vld [vmem:[%s2760_s26 + $0x40] sm:$0xff]  ;;  %v86_v33 = vld [vmem:[%s2760_s26 + $0xd8] sm:$0xff]  ;;  %v85_v36 = vld [vmem:[%s2760_s26 + $0xd0] sm:$0xff] }
  0x12   :  { %245 = vmatpush.msra.mxu1 %v79_v13  ;;  %1768 = vmatmul.msk.f32.vlgmr.msra.gmra.mxu2 %vm123_vm0, %v2071_v14  ;;  %v71_v30 = vld [vmem:[%s2760_s26 + $0x60] sm:$0xff]  ;;  %v90_v34 = vld [vmem:[%s2760_s26 + $0xf8] sm:$0xff]  ;;  %v89_v37 = vld [vmem:[%s2760_s26 + $0xf0] sm:$0xff] }
  0x13   :  { %224 = vmatpush.msra.mxu0 %v76_v15  ;;  %1772 = vmatmul.msk.f32.vlgmr.msra.gmra.mxu1 %vm123_vm0, %v2079_v16  ;;  %v84_v39 = vld [vmem:[%s2760_s26 + $0xc8] sm:$0xff]  ;;  %v83_v42 = vld [vmem:[%s2760_s26 + $0xc0] sm:$0xff]  ;;  %v304_v51 = vld [vmem:[%s2741_s3 + $0x70] sm:$0xff] }
  0x14   :  { %179 = vmatpush.msrb.mxu2 %v70_v17  ;;  %199 = vmatpush.msrb.mxu3 %v74_v18  ;;  %v88_v41 = vld [vmem:[%s2760_s26 + $0xe8] sm:$0xff]  ;;  %v87_v44 = vld [vmem:[%s2760_s26 + $0xe0] sm:$0xff]  ;;  %v317_v58 = vld [vmem:[%s2741_s3 + $0xd8] sm:$0xff] }
  0x15   :  { %386 = vmatpush.msrb.mxu1 %v297_v19  ;;  %225 = vmatpush.msra.mxu0 %v75_v20  ;;  %v299_v53 = vld [vmem:[%s2741_s3 + $0x48] sm:$0xff]  ;;  %v306_v55 = vld [vmem:[%s2741_s3 + $0x80] sm:$0xff]  ;;  %v321_v59 = vld [vmem:[%s2741_s3 + $0xf8] sm:$0xff] }
  0x16   :  { %180 = vmatpush.msrb.mxu2 %v69_v21  ;;  %200 = vmatpush.msrb.mxu3 %v73_v22  ;;  %v303_v54 = vld [vmem:[%s2741_s3 + $0x68] sm:$0xff]  ;;  %v298_v56 = vld [vmem:[%s2741_s3 + $0x40] sm:$0xff]  ;;  %v521_v60 = vld [vmem:[%s2743_s5 + $0x38] sm:$0xff] }
  0x17   :  { %1771 = vmatmul.msk.f32.vlgmr.msra.gmra.mxu0 %vm123_vm0, %v2079_v16  ;;  %387 = vmatpush.msrb.mxu1 %v296_v23  ;;  %v302_v57 = vld [vmem:[%s2741_s3 + $0x60] sm:$0xff]  ;;  %v316_v61 = vld [vmem:[%s2741_s3 + $0xd0] sm:$0xff]  ;;  %v517_v62 = vld [vmem:[%s2743_s5 + $0x18] sm:$0xff] }
  0x18   :  { %366 = vmatpush.msrb.mxu0 %v293_v24  ;;  %181 = vmatpush.msrb.mxu2 %v68_v25 }
  0x19   :  { %201 = vmatpush.msrb.mxu3 %v72_v26  ;;  %388 = vmatpush.msrb.mxu1 %v295_v27 }
  0x1a   :  { %367 = vmatpush.msrb.mxu0 %v292_v28  ;;  %182 = vmatpush.msrb.mxu2 %v67_v29 }
  0x1b   :  { %202 = vmatpush.msrb.mxu3 %v71_v30  ;;  %389 = vmatpush.msrb.mxu1 %v294_v31 }
  0x1c   :  { %1769 = vmatmul.msk.f32.vlgmr.msrb.gmra.mxu2 %vm123_vm0, %v2071_v14  ;;  %1770 = vmatmul.msk.f32.vlgmr.msrb.gmra.mxu3 %vm123_vm0, %v2071_v14 }
  0x1d   :  { %368 = vmatpush.msrb.mxu0 %v291_v32  ;;  %1776 = vmatmul.msk.f32.vlgmr.msrb.gmra.mxu1 %vm123_vm0, %v2071_v14 }
  0x1e   :  { %262 = vmatpush.msra.mxu2 %v86_v33  ;;  %282 = vmatpush.msra.mxu3 %v90_v34 }
  0x1f   :  { %369 = vmatpush.msrb.mxu0 %v290_v35  ;;  %466 = vmatpush.msra.mxu1 %v313_v38 }
  0x20   :  { %263 = vmatpush.msra.mxu2 %v85_v36  ;;  %1775 = vmatmul.msk.f32.vlgmr.msrb.gmra.mxu0 %vm123_vm0, %v2071_v14 }
  0x21   :  { %283 = vmatpush.msra.mxu3 %v89_v37  ;;  %446 = vmatpush.msra.mxu0 %v309_v40 }
  0x22   :  { %264 = vmatpush.msra.mxu2 %v84_v39  ;;  %467 = vmatpush.msra.mxu1 %v312_v43 }
  0x23   :  { %284 = vmatpush.msra.mxu3 %v88_v41  ;;  %447 = vmatpush.msra.mxu0 %v308_v46 }
  0x24   :  { %265 = vmatpush.msra.mxu2 %v83_v42  ;;  %468 = vmatpush.msra.mxu1 %v311_v48 }
  0x25   :  { %285 = vmatpush.msra.mxu3 %v87_v44  ;;  %1773 = vmatmul.msk.f32.vlgmr.msra.gmra.mxu2 %vm123_vm0, %v2079_v16 }
  0x26   :  { %1774 = vmatmul.msk.f32.vlgmr.msra.gmra.mxu3 %vm123_vm0, %v2079_v16  ;;  %406 = vmatpush.msrb.mxu2 %v301_v45 }
  0x27   :  { %426 = vmatpush.msrb.mxu3 %v305_v47  ;;  %448 = vmatpush.msra.mxu0 %v307_v50 }
  0x28   :  { %407 = vmatpush.msrb.mxu2 %v300_v49  ;;  %469 = vmatpush.msra.mxu1 %v310_v52 }
  0x29   :  { %427 = vmatpush.msrb.mxu3 %v304_v51  ;;  %1780 = vmatmul.msk.f32.vlgmr.msra.gmra.mxu1 %vm123_vm0, %v2079_v16 }
  0x2a   :  { %408 = vmatpush.msrb.mxu2 %v299_v53  ;;  %449 = vmatpush.msra.mxu0 %v306_v55 }
  0x2b   :  { %428 = vmatpush.msrb.mxu3 %v303_v54  ;;  %1779 = vmatmul.msk.f32.vlgmr.msra.gmra.mxu0 %vm123_vm0, %v2079_v16 }
  0x2c   :  { %409 = vmatpush.msrb.mxu2 %v298_v56 }
  0x2d   :  { %429 = vmatpush.msrb.mxu3 %v302_v57  ;;  %1777 = vmatmul.msk.f32.vlgmr.msrb.gmra.mxu2 %vm123_vm0, %v2071_v14 }
  0x2e   :  { %22 = vsyncpa [#allocation3], 0  ;;  %1778 = vmatmul.msk.f32.vlgmr.msrb.gmra.mxu3 %vm123_vm0, %v2071_v14  ;;  %486 = vmatpush.msra.mxu2 %v317_v58  ;;  %v320_v63 = vld [vmem:[%s2741_s3 + $0xf0] sm:$0xff]  ;;  %v315_v1 = vld [vmem:[%s2741_s3 + $0xc8] sm:$0xff]  ;;  %vm738_vm1 = vcmask 64512   ;;  %s1755_s30 = sshll.u32 %s2755_s17, 4  ;;  %s1756_s30 = int_to_ptr.hbm [resolvable:$true] %s1755_s30 }
  0x2f   :  { %v520_v0 = vld [vmem:[%s2743_s5 + $0x30] sm:$0xff]  ;;  %506 = vmatpush.msra.mxu3 %v321_v59  ;;  %610 = vmatpush.msrb.mxu1 %v521_v60  ;;  %v319_v3 = vld [vmem:[%s2741_s3 + $0xe8] sm:$0xff]  ;;  %v314_v5 = vld [vmem:[%s2741_s3 + $0xc0] sm:$0xff]  ;;  %s1935_s18 = smov 8  }
  0x30   :  { %v516_v2 = vld [vmem:[%s2743_s5 + $0x10] sm:$0xff]  ;;  %487 = vmatpush.msra.mxu2 %v316_v61  ;;  %590 = vmatpush.msrb.mxu0 %v517_v62  ;;  %v519_v4 = vld [vmem:[%s2743_s5 + $0x28] sm:$0xff]  ;;  %v318_v7 = vld [vmem:[%s2741_s3 + $0xe0] sm:$0xff] }
  0x31   :  { %507 = vmatpush.msra.mxu3 %v320_v63  ;;  %611 = vmatpush.msrb.mxu1 %v520_v0  ;;  %v515_v6 = vld [vmem:[%s2743_s5 + $0x8] sm:$0xff]  ;;  %v518_v8 = vld [vmem:[%s2743_s5 + $0x20] sm:$0xff]  ;;  %v537_v9 = vld [vmem:[%s2743_s5 + $0xb8] sm:$0xff] }
  0x32   :  { %488 = vmatpush.msra.mxu2 %v315_v1  ;;  %591 = vmatpush.msrb.mxu0 %v516_v2  ;;  %v514_v10 = vld [vmem:[%s2743_s5] sm:$0xff]  ;;  %v536_v11 = vld [vmem:[%s2743_s5 + $0xb0] sm:$0xff]  ;;  %v533_v12 = vld [vmem:[%s2743_s5 + $0x98] sm:$0xff] }
  0x33   :  { %508 = vmatpush.msra.mxu3 %v319_v3  ;;  %612 = vmatpush.msrb.mxu1 %v519_v4  ;;  %v535_v13 = vld [vmem:[%s2743_s5 + $0xa8] sm:$0xff]  ;;  %v532_v15 = vld [vmem:[%s2743_s5 + $0x90] sm:$0xff]  ;;  %v534_v17 = vld [vmem:[%s2743_s5 + $0xa0] sm:$0xff] }
  0x34   :  { %489 = vmatpush.msra.mxu2 %v314_v5  ;;  %592 = vmatpush.msrb.mxu0 %v515_v6  ;;  %v531_v18 = vld [vmem:[%s2743_s5 + $0x88] sm:$0xff]  ;;  %v530_v19 = vld [vmem:[%s2743_s5 + $0x80] sm:$0xff]  ;;  %v525_v20 = vld [vmem:[%s2743_s5 + $0x58] sm:$0xff] }
  0x35   :  { %509 = vmatpush.msra.mxu3 %v318_v7  ;;  %1781 = vmatmul.msk.f32.vlgmr.msra.gmra.mxu2 %vm123_vm0, %v2079_v16  ;;  %v529_v21 = vld [vmem:[%s2743_s5 + $0x78] sm:$0xff]  ;;  %v524_v22 = vld [vmem:[%s2743_s5 + $0x50] sm:$0xff]  ;;  %v523_v24 = vld [vmem:[%s2743_s5 + $0x48] sm:$0xff] }
  0x36   :  { %1782 = vmatmul.msk.f32.vlgmr.msra.gmra.mxu3 %vm123_vm0, %v2079_v16  ;;  %613 = vmatpush.msrb.mxu1 %v518_v8  ;;  %v528_v23 = vld [vmem:[%s2743_s5 + $0x70] sm:$0xff]  ;;  %v527_v25 = vld [vmem:[%s2743_s5 + $0x68] sm:$0xff]  ;;  %v522_v26 = vld [vmem:[%s2743_s5 + $0x40] sm:$0xff] }
  0x37   :  { %1784 = vmatmul.msk.f32.vlgmr.msrb.gmra.mxu1 %vm123_vm0, %v2071_v14  ;;  %593 = vmatpush.msrb.mxu0 %v514_v10  ;;  %v526_v27 = vld [vmem:[%s2743_s5 + $0x60] sm:$0xff]  ;;  %v541_v28 = vld [vmem:[%s2743_s5 + $0xd8] sm:$0xff]  ;;  %v540_v30 = vld [vmem:[%s2743_s5 + $0xd0] sm:$0xff] }
  0x38   :  { %690 = vmatpush.msra.mxu1 %v537_v9  ;;  %1783 = vmatmul.msk.f32.vlgmr.msrb.gmra.mxu0 %vm123_vm0, %v2071_v14  ;;  %v545_v29 = vld [vmem:[%s2743_s5 + $0xf8] sm:$0xff]  ;;  %v544_v31 = vld [vmem:[%s2743_s5 + $0xf0] sm:$0xff]  ;;  %v539_v32 = vld [vmem:[%s2743_s5 + $0xc8] sm:$0xff] }
  0x39   :  { %670 = vmatpush.msra.mxu0 %v533_v12  ;;  %630 = vmatpush.msrb.mxu2 %v525_v20  ;;  %v538_v33 = vld [vmem:[%s2743_s5 + $0xc0] sm:$0xff] }
  0x3a   :  { %691 = vmatpush.msra.mxu1 %v536_v11  ;;  %650 = vmatpush.msrb.mxu3 %v529_v21  ;;  %v542_v34 = vld [vmem:[%s2743_s5 + $0xe0] sm:$0xff] }
  0x3b   :  { %671 = vmatpush.msra.mxu0 %v532_v15  ;;  %631 = vmatpush.msrb.mxu2 %v524_v22  ;;  %v1835_v39 = vld [vmem:[%s2742_s4 + $0x1] ss:$0 sm:$0xff]  ;;  %v1836_v40 = vld [vmem:[%s2742_s4] ss:$0 sm:$0xff]  ;;  %v1843_v50 = vld [vmem:[%s2742_s4 + $0x5] ss:$0 sm:$0xff] }
  0x3c   :  { %692 = vmatpush.msra.mxu1 %v535_v13  ;;  %651 = vmatpush.msrb.mxu3 %v528_v23  ;;  %v1833_v41 = vld [vmem:[%s2740_s2] ss:$0 sm:$0xff]  ;;  %v1831_v51 = vld [vmem:[%s2740_s2 + $0x5] ss:$0 sm:$0xff]  ;;  %v1846_v52 = vld [vmem:[%s2742_s4 + $0x4] ss:$0 sm:$0xff] }
  0x3d   :  { %672 = vmatpush.msra.mxu0 %v531_v18  ;;  %632 = vmatpush.msrb.mxu2 %v523_v24  ;;  %v1832_v53 = vld [vmem:[%s2740_s2 + $0x4] ss:$0 sm:$0xff]  ;;  %v1841_v62 = vld [vmem:[%s2742_s4 + $0x2] ss:$0 sm:$0xff]  ;;  %v1842_v63 = vld [vmem:[%s2742_s4 + $0x3] ss:$0 sm:$0xff] }
  0x3e   :  { %693 = vmatpush.msra.mxu1 %v534_v17  ;;  %652 = vmatpush.msrb.mxu3 %v527_v25  ;;  %v1837_v0 = vld [vmem:[%s2740_s2 + $0x2] ss:$0 sm:$0xff]  ;;  %v1838_v2 = vld [vmem:[%s2740_s2 + $0x3] ss:$0 sm:$0xff]  ;;  %v1847_v5 = vld [vmem:[%s2744_s6 + $0x1] ss:$0 sm:$0xff] }
  0x3f   :  { %1788 = vmatmul.msk.f32.vlgmr.msra.gmra.mxu1 %vm123_vm0, %v2079_v16  ;;  %673 = vmatpush.msra.mxu0 %v530_v19  ;;  %v1844_v10 = vld [vmem:[%s2742_s4 + $0x6] ss:$0 sm:$0xff]  ;;  %v1845_v12 = vld [vmem:[%s2742_s4 + $0x7] ss:$0 sm:$0xff]  ;;  %v1848_v23 = vld [vmem:[%s2744_s6] ss:$0 sm:$0xff] }
  0x40   :  { %1787 = vmatmul.msk.f32.vlgmr.msra.gmra.mxu0 %vm123_vm0, %v2079_v16  ;;  %633 = vmatpush.msrb.mxu2 %v522_v26  ;;  %v1839_v13 = vld [vmem:[%s2740_s2 + $0x6] ss:$0 sm:$0xff]  ;;  %v1840_v17 = vld [vmem:[%s2740_s2 + $0x7] ss:$0 sm:$0xff]  ;;  %v1849_v26 = vld [vmem:[%s2744_s6 + $0x5] ss:$0 sm:$0xff] }
  0x41   :  { %653 = vmatpush.msrb.mxu3 %v526_v27  ;;  %1785 = vmatmul.msk.f32.vlgmr.msrb.gmra.mxu2 %vm123_vm0, %v2071_v14 }
  0x42   :  { %1786 = vmatmul.msk.f32.vlgmr.msrb.gmra.mxu3 %vm123_vm0, %v2071_v14  ;;  %710 = vmatpush.msra.mxu2 %v541_v28  ;;  %v543_v14 = vld [vmem:[%s2743_s5 + $0xe8] sm:$0xff]  ;;  %v1850_v28 = vld [vmem:[%s2744_s6 + $0x4] ss:$0 sm:$0xff] }
  0x43   :  { %730 = vmatpush.msra.mxu3 %v545_v29 }
  0x44   :  { %711 = vmatpush.msra.mxu2 %v540_v30 }
  0x45   :  { %731 = vmatpush.msra.mxu3 %v544_v31 }
  0x46   :  { %712 = vmatpush.msra.mxu2 %v539_v32  ;;  %v1851_v32 = vld [vmem:[%s2744_s6 + $0x2] ss:$0 sm:$0xff] }
  0x47   :  { %732 = vmatpush.msra.mxu3 %v543_v14  ;;  %v1852_v14 = vld [vmem:[%s2744_s6 + $0x3] ss:$0 sm:$0xff] }
  0x48   :  { %713 = vmatpush.msra.mxu2 %v538_v33 }
  0x49   :  { %733 = vmatpush.msra.mxu3 %v542_v34  ;;  %1789 = vmatmul.msk.f32.vlgmr.msra.gmra.mxu2 %vm123_vm0, %v2079_v16 }
  0x4a   :  { %1790 = vmatmul.msk.f32.vlgmr.msra.gmra.mxu3 %vm123_vm0, %v2079_v16  ;;  %v1834_v16 = vld [vmem:[%s2740_s2 + $0x1] ss:$0 sm:$0xff] }
  0x90   :  { %v247_v35 = vpop.f32.mrf.mxu1 }
  0x91   :  { %v248_v57 = vadd.f32 %v1831_v51, %v247_v35 }
  0x94   :  { %v227_v36 = vpop.f32.mrf.mxu0  ;;  %v144_v37 = vpop.f32.mrf.mxu3 }
  0x95   :  { %v164_v38 = vpop.f32.mrf.mxu2  ;;  %v145_v46 = vadd.f32 %v1833_v41, %v144_v37  ;;  %v228_v61 = vadd.f32 %v1832_v53, %v227_v36  ;;  %v1853_v37 = vld [vmem:[%s2744_s6 + $0x6] ss:$0 sm:$0xff] }
  0x96   :  { %v165_v47 = vadd.f32 %v1834_v16, %v164_v38  ;;  %v1854_v38 = vld [vmem:[%s2744_s6 + $0x7] ss:$0 sm:$0xff] }
  0x9a   :  { %v391_v42 = vpop.f32.mrf.mxu1 }
  0x9b   :  { %v392_v43 = vadd.f32 %v1835_v39, %v391_v42 }
  0x9d   :  { %v371_v44 = vpop.f32.mrf.mxu0  ;;  %1793 = vmatpush.xpose.msk.msrb.mxu1 %vm738_vm1, %v392_v43 }
  0x9e   :  { %v372_v45 = vadd.f32 %v1836_v40, %v371_v44 }
  0x9f   :  { %v184_v48 = vpop.f32.mrf.mxu2  ;;  %v204_v49 = vpop.f32.mrf.mxu3 }
  0xa0   :  { %1791 = vmatpush.xpose.msk.msrb.mxu0 %vm738_vm1, %v372_v45  ;;  %1794 = vmatmul.msk.f32.vlgmr.msrb.gmra.mxu1 %vm738_vm1, %v165_v47  ;;  %v185_v7 = vadd.f32 %v1837_v0, %v184_v48  ;;  %v205_v9 = vadd.f32 %v1838_v2, %v204_v49 }
  0xa3   :  { %1792 = vmatmul.msk.f32.vlgmr.msrb.gmra.mxu0 %vm738_vm1, %v145_v46 }
  0xa6   :  { %v471_v54 = vpop.f32.mrf.mxu1 }
  0xa7   :  { %v472_v56 = vadd.f32 %v1843_v50, %v471_v54 }
  0xa8   :  { %v267_v55 = vpop.f32.mrf.mxu2  ;;  %v451_v59 = vpop.f32.mrf.mxu0 }
  0xa9   :  { %v287_v58 = vpop.f32.mrf.mxu3  ;;  %1801 = vmatpush.xpose.msk.msra.mxu1 %vm738_vm1, %v472_v56  ;;  %v452_v60 = vadd.f32 %v1846_v52, %v451_v59  ;;  %v268_v21 = vadd.f32 %v1839_v13, %v267_v55 }
  0xaa   :  { %v288_v22 = vadd.f32 %v1840_v17, %v287_v58 }
  0xab   :  { %1799 = vmatpush.xpose.msk.msra.mxu0 %vm738_vm1, %v452_v60 }
  0xac   :  { %1802 = vmatmul.msk.f32.vlgmr.msra.gmra.mxu1 %vm738_vm1, %v248_v57 }
  0xae   :  { %1800 = vmatmul.msk.f32.vlgmr.msra.gmra.mxu0 %vm738_vm1, %v228_v61 }
  0xb0   :  { %v411_v1 = vpop.f32.mrf.mxu2 }
  0xb1   :  { %v412_v3 = vadd.f32 %v1841_v62, %v411_v1  ;;  %v431_v4 = vpop.f32.mrf.mxu3 }
  0xb2   :  { %v432_v6 = vadd.f32 %v1842_v63, %v431_v4 }
  0xb3   :  { %1795 = vmatpush.xpose.msk.msrb.mxu2 %vm738_vm1, %v412_v3 }
  0xb4   :  { %1797 = vmatpush.xpose.msk.msrb.mxu3 %vm738_vm1, %v432_v6  ;;  %v615_v8 = vpop.f32.mrf.mxu1 }
  0xb5   :  { %v616_v11 = vadd.f32 %v1847_v5, %v615_v8  ;;  %v595_v24 = vpop.f32.mrf.mxu0 }
  0xb6   :  { %1796 = vmatmul.msk.f32.vlgmr.msrb.gmra.mxu2 %vm738_vm1, %v185_v7  ;;  %v596_v25 = vadd.f32 %v1848_v23, %v595_v24 }
  0xb7   :  { %1798 = vmatmul.msk.f32.vlgmr.msrb.gmra.mxu3 %vm738_vm1, %v205_v9  ;;  %1188 = vmatpush.msrb.mxu1 %v616_v11 }
  0xb8   :  { %v491_v15 = vpop.f32.mrf.mxu2  ;;  %1165 = vmatpush.msrb.mxu0 %v596_v25 }
  0xb9   :  { %v492_v18 = vadd.f32 %v1844_v10, %v491_v15  ;;  %v511_v19 = vpop.f32.mrf.mxu3 }
  0xba   :  { %v512_v20 = vadd.f32 %v1845_v12, %v511_v19 }
  0xbb   :  { %1803 = vmatpush.xpose.msk.msra.mxu2 %vm738_vm1, %v492_v18 }
  0xbc   :  { %1805 = vmatpush.xpose.msk.msra.mxu3 %vm738_vm1, %v512_v20  ;;  %v695_v27 = vpop.f32.mrf.mxu1 }
  0xbd   :  { %v696_v29 = vadd.f32 %v1849_v26, %v695_v27  ;;  %v675_v30 = vpop.f32.mrf.mxu0 }
  0xbe   :  { %1804 = vmatmul.msk.f32.vlgmr.msra.gmra.mxu2 %vm738_vm1, %v268_v21  ;;  %v676_v31 = vadd.f32 %v1850_v28, %v675_v30 }
  0xbf   :  { %1806 = vmatmul.msk.f32.vlgmr.msra.gmra.mxu3 %vm738_vm1, %v288_v22  ;;  %1280 = vmatpush.msra.mxu1 %v696_v29 }
  0xc0   :  { %1257 = vmatpush.msra.mxu0 %v676_v31 }
  0xc4   :  { %v635_v33 = vpop.f32.mrf.mxu2 }
  0xc5   :  { %v655_v34 = vpop.f32.mrf.mxu3  ;;  %v636_v35 = vadd.f32 %v1851_v32, %v635_v33 }
  0xc6   :  { %v656_v36 = vadd.f32 %v1852_v14, %v655_v34 }
  0xc7   :  { %1211 = vmatpush.msrb.mxu2 %v636_v35 }
  0xc8   :  { %1234 = vmatpush.msrb.mxu3 %v656_v36 }
  0xcc   :  { %v715_v39 = vpop.f32.mrf.mxu2 }
  0xcd   :  { %v735_v40 = vpop.f32.mrf.mxu3  ;;  %v716_v41 = vadd.f32 %v1853_v37, %v715_v39 }
  0xce   :  { %v736_v16 = vadd.f32 %v1854_v38, %v735_v40 }
  0xcf   :  { %1303 = vmatpush.msra.mxu2 %v716_v41 }
  0xd0   :  { %1326 = vmatpush.msra.mxu3 %v736_v16 }
 0x11d   :  { %v788_v42 = vpop.f32.mrf.mxu1 }
 0x11e   :  { %v948_v43 = vmul.f32 0.35355338, %v788_v42 }
 0x120   :  { %v958_v44 = vsel %vm738_vm1, %v948_v43, -inf  ;;  %v762_v49 = vpop.f32.mrf.mxu0 }
 0x121   :  { %959 = vmax.xlane.f32.xlu2 %v958_v44  ;;  %v947_v59 = vmul.f32 0.35355338, %v762_v49 }
 0x123   :  { %v955_v61 = vsel %vm738_vm1, %v947_v59, -inf }
 0x129   :  { %v892_v63 = vpop.f32.mrf.mxu1 }
 0x12a   :  { %v952_v0 = vmul.f32 0.35355338, %v892_v63 }
 0x12b   :  { %v866_v57 = vpop.f32.mrf.mxu0 }
 0x12c   :  { %v951_v60 = vmul.f32 0.35355338, %v866_v57  ;;  %v970_v1 = vsel %vm738_vm1, %v952_v0, -inf }
 0x12e   :  { %v967_v62 = vsel %vm738_vm1, %v951_v60, -inf }
 0x139   :  { %v814_v45 = vpop.f32.mrf.mxu2 }
 0x13a   :  { %v949_v46 = vmul.f32 0.35355338, %v814_v45  ;;  %v840_v47 = vpop.f32.mrf.mxu3 }
 0x13b   :  { %v950_v50 = vmul.f32 0.35355338, %v840_v47 }
 0x13c   :  { %v961_v48 = vsel %vm738_vm1, %v949_v46, -inf }
 0x13d   :  { %962 = vmax.xlane.f32.xlu0 %v961_v48  ;;  %v964_v56 = vsel %vm738_vm1, %v950_v50, -inf }
 0x141   :  { %v918_v51 = vpop.f32.mrf.mxu2 }
 0x142   :  { %v953_v52 = vmul.f32 0.35355338, %v918_v51  ;;  %v944_v53 = vpop.f32.mrf.mxu3 }
 0x143   :  { %v954_v54 = vmul.f32 0.35355338, %v944_v53 }
 0x144   :  { %v973_v55 = vsel %vm738_vm1, %v953_v52, -inf }
 0x145   :  { %974 = vmax.xlane.f32.xlu1 %v973_v55  ;;  %965 = vmax.xlane.f32.xlu0 %v964_v56  ;;  %v976_v58 = vsel %vm738_vm1, %v954_v54, -inf }
 0x146   :  { %977 = vmax.xlane.f32.xlu2 %v976_v58 }
 0x14d   :  { %956 = vmax.xlane.f32.xlu1 %v955_v61  ;;  %968 = vmax.xlane.f32.xlu0 %v967_v62 }
 0x155   :  { %971 = vmax.xlane.f32.xlu1 %v970_v1 }
 0x194   :  { %v960_v3 = vpop.xlane.xlu2 %959 }
 0x195   :  { %v980_v17 = vsub.f32 %v948_v43, %v960_v3 }
 0x197   :  { %v989_v20 = vmul.f32 1.442695, %v980_v17 }
 0x1b0   :  { %v963_v2 = vpop.xlane.xlu0 %962 }
 0x1b1   :  { %v981_v4 = vsub.f32 %v949_v46, %v963_v2 }
 0x1b3   :  { %v991_v5 = vmul.f32 1.442695, %v981_v4 }
 0x1b5   :  { %1862 = vpow2.f32 %v991_v5 }
 0x1b8   :  { %v975_v6 = vpop.xlane.xlu1 %974  ;;  %v966_v7 = vpop.xlane.xlu0 %965 }
 0x1b9   :  { %v985_v8 = vsub.f32 %v953_v52, %v975_v6  ;;  %v982_v9 = vsub.f32 %v950_v50, %v966_v7  ;;  %v978_v10 = vpop.xlane.xlu2 %977 }
 0x1ba   :  { %v986_v15 = vsub.f32 %v954_v54, %v978_v10 }
 0x1bb   :  { %v2468_v11 = vpop.eup %1862  ;;  %v999_v12 = vmul.f32 1.442695, %v985_v8  ;;  %v993_v13 = vmul.f32 1.442695, %v982_v9 }
 0x1bc   :  { %v1009_v18 = vsel %vm738_vm1, %v2468_v11, 0.0  ;;  %v1001_v19 = vmul.f32 1.442695, %v986_v15 }
 0x1bd   :  { %1864 = vpow2.f32 %v999_v12  ;;  %1010 = vadd.xlane.f32.xlu2 %v1009_v18 }
 0x1be   :  { %1866 = vpow2.f32 %v993_v13 }
 0x1bf   :  { %1868 = vpow2.f32 %v1001_v19 }
 0x1c0   :  { %v957_v21 = vpop.xlane.xlu1 %956  ;;  %v969_v22 = vpop.xlane.xlu0 %968  ;;  %1870 = vpow2.f32 %v989_v20 }
 0x1c1   :  { %v979_v23 = vsub.f32 %v947_v59, %v957_v21  ;;  %v983_v26 = vsub.f32 %v951_v60, %v969_v22 }
 0x1c3   :  { %v2472_v24 = vpop.eup %1864  ;;  %v987_v25 = vmul.f32 1.442695, %v979_v23  ;;  %v995_v30 = vmul.f32 1.442695, %v983_v26 }
 0x1c4   :  { %v2474_v27 = vpop.eup %1866  ;;  %v1021_v28 = vsel %vm738_vm1, %v2472_v24, 0.0 }
 0x1c5   :  { %1872 = vpow2.f32 %v987_v25  ;;  %1022 = vadd.xlane.f32.xlu1 %v1021_v28  ;;  %v1012_v29 = vsel %vm738_vm1, %v2474_v27, 0.0  ;;  %v2480_v32 = vpop.eup %1868 }
 0x1c6   :  { %1013 = vadd.xlane.f32.xlu0 %v1012_v29  ;;  %v2482_v33 = vpop.eup %1870  ;;  %1874 = vpow2.f32 %v995_v30  ;;  %v1024_v36 = vsel %vm738_vm1, %v2480_v32, 0.0 }
 0x1c7   :  { %v1006_v38 = vsel %vm738_vm1, %v2482_v33, 0.0 }
 0x1c8   :  { %v972_v31 = vpop.xlane.xlu1 %971 }
 0x1c9   :  { %v984_v14 = vsub.f32 %v952_v0, %v972_v31 }
 0x1cb   :  { %v2484_v34 = vpop.eup %1872  ;;  %v997_v35 = vmul.f32 1.442695, %v984_v14 }
 0x1cc   :  { %v1003_v37 = vsel %vm738_vm1, %v2484_v34, 0.0  ;;  %v2492_v39 = vpop.eup %1874 }
 0x1cd   :  { %1876 = vpow2.f32 %v997_v35  ;;  %1025 = vadd.xlane.f32.xlu1 %v1024_v36  ;;  %1004 = vadd.xlane.f32.xlu2 %v1003_v37  ;;  %v1015_v16 = vsel %vm738_vm1, %v2492_v39, 0.0 }
 0x1ce   :  { %1007 = vadd.xlane.f32.xlu0 %v1006_v38 }
 0x1d3   :  { %v2494_v40 = vpop.eup %1876 }
 0x1d4   :  { %v1018_v41 = vsel %vm738_vm1, %v2494_v40, 0.0 }
 0x1d5   :  { %1016 = vadd.xlane.f32.xlu2 %v1015_v16 }
 0x1d6   :  { %1019 = vadd.xlane.f32.xlu0 %v1018_v41 }
 0x230   :  { %v1011_v42 = vpop.xlane.xlu2 %1010 }
 0x231   :  { %1878 = vrcp.f32 %v1011_v42  ;;  %v1064_v49 = vand.u32 2147483647, %v1011_v42  ;;  %v1066_v51 = vand.u32 2147483648, %v1011_v42  ;;  %vm1060_vm3 = vweird.f32 %v1011_v42 }
 0x233   :  { %vm1065_vm5 = vcmp.eq.f32.partialorder %v1064_v49, 8.507059e+37  ;;  %v1067_v61 = vor.u32 1.1754944e-38, %v1066_v51 }
 0x237   :  { %v1879_v43 = vpop.eup %1878 }
 0x238   :  { %v1056_v44 = vmul.f32 %v1879_v43, %v1011_v42  ;;  %v1023_v45 = vpop.xlane.xlu1 %1022  ;;  %vm1061_vm2 = vweird.f32 %v1879_v43 }
 0x239   :  { %1880 = vrcp.f32 %v1023_v45  ;;  %v1014_v46 = vpop.xlane.xlu0 %1013  ;;  %vm2500_vm4 = vmor %vm1060_vm3, %vm1061_vm2  ;;  %vm1116_vm6 = vweird.f32 %v1023_v45  ;;  %v1120_v63 = vand.u32 2147483647, %v1023_v45  ;;  %v1122_v0 = vand.u32 2147483648, %v1023_v45 }
 0x23a   :  { %v1057_v47 = vsub.f32 1.0, %v1056_v44  ;;  %1882 = vrcp.f32 %v1014_v46  ;;  %v1078_v2 = vand.u32 2147483647, %v1014_v46  ;;  %v1080_v5 = vand.u32 2147483648, %v1014_v46 }
 0x23b   :  { %vm1074_vm8 = vweird.f32 %v1014_v46  ;;  %vm2515_vm10 = vcmp.eq.f32.partialorder %v1120_v63, 8.507059e+37  ;;  %v1123_v15 = vor.u32 1.1754944e-38, %v1122_v0 }
 0x23c   :  { %v1058_v48 = vmul.f32 %v1879_v43, %v1057_v47  ;;  %vm2526_vm12 = vcmp.eq.f32.partialorder %v1078_v2, 8.507059e+37  ;;  %v1081_v22 = vor.u32 1.1754944e-38, %v1080_v5 }
 0x23e   :  { %v1059_v50 = vadd.f32 %v1879_v43, %v1058_v48 }
 0x23f   :  { %v1881_v52 = vpop.eup %1880 }
 0x240   :  { %v1883_v53 = vpop.eup %1882  ;;  %v1112_v55 = vmul.f32 %v1881_v52, %v1023_v45  ;;  %v2504_v56 = vpop.xlane.xlu2 %1004  ;;  %v1063_v58 = vsel %vm2500_vm4, %v1879_v43, %v1059_v50  ;;  %vm1117_vm7 = vweird.f32 %v1881_v52 }
 0x241   :  { %v2506_v57 = vpop.xlane.xlu1 %1025  ;;  %v1070_v59 = vmul.f32 %v1883_v53, %v1014_v46  ;;  %1884 = vrcp.f32 %v2504_v56  ;;  %v2511_v60 = vpop.xlane.xlu0 %1007  ;;  %v1068_v3 = vsel %vm1065_vm5, %v1067_v61, %v1063_v58  ;;  %vm1075_vm9 = vweird.f32 %v1883_v53  ;;  %vm2522_vm11 = vmor %vm1116_vm6, %vm1117_vm7 }
 0x242   :  { %v1113_v62 = vsub.f32 1.0, %v1112_v55  ;;  %1886 = vrcp.f32 %v2506_v57  ;;  %v1036_v9 = vand.u32 2147483647, %v2504_v56  ;;  %v1038_v10 = vand.u32 2147483648, %v2504_v56  ;;  %vm2533_vm13 = vmor %vm1074_vm8, %vm1075_vm9 }
 0x243   :  { %v1071_v1 = vsub.f32 1.0, %v1070_v59  ;;  %1888 = vrcp.f32 %v2511_v60  ;;  %v1141_v19 = vmul.f32 %v2468_v11, %v1068_v3  ;;  %vm1032_vm14 = vweird.f32 %v2504_v56 }
 0x244   :  { %v1114_v4 = vmul.f32 %v1881_v52, %v1113_v62  ;;  %vm1130_vm15 = vweird.f32 %v2506_v57  ;;  %v1134_v11 = vand.u32 2147483647, %v2506_v57  ;;  %vm2549_vm2 = vcmp.eq.f32.partialorder %v1036_v9, 8.507059e+37 }
 0x245   :  { %v1072_v6 = vmul.f32 %v1883_v53, %v1071_v1  ;;  %1809 = vmatmul.msk.f32.vlgmr.msrb.gmra.mxu2 %vm738_vm1, %v1141_v19  ;;  %v1039_v14 = vor.u32 1.1754944e-38, %v1038_v10  ;;  %v1136_v38 = vand.u32 2147483648, %v2506_v57  ;;  %vm1046_vm5 = vweird.f32 %v2511_v60 }
 0x246   :  { %v1115_v7 = vadd.f32 %v1881_v52, %v1114_v4  ;;  %vm2561_vm4 = vcmp.eq.f32.partialorder %v1134_v11, 8.507059e+37  ;;  %v1050_v45 = vand.u32 2147483647, %v2511_v60  ;;  %v1052_v46 = vand.u32 2147483648, %v2511_v60  ;;  %v1335_v11 = vld [vmem:[%s2745_s7 + $0x20] sm:$0xff] }
 0x247   :  { %v1885_v12 = vpop.eup %1884  ;;  %v1073_v17 = vadd.f32 %v1883_v53, %v1072_v6  ;;  %v1137_v51 = vor.u32 1.1754944e-38, %v1136_v38 }
 0x248   :  { %v1119_v20 = vsel %vm2522_vm11, %v1881_v52, %v1115_v7  ;;  %v1028_v23 = vmul.f32 %v1885_v12, %v2504_v56  ;;  %v2539_v25 = vpop.xlane.xlu2 %1016  ;;  %v1887_v26 = vpop.eup %1886  ;;  %vm1033_vm3 = vweird.f32 %v1885_v12  ;;  %v1053_v63 = vor.u32 1.1754944e-38, %v1052_v46 }
 0x249   :  { %v1077_v28 = vsel %vm2533_vm13, %v1883_v53, %v1073_v17  ;;  %1890 = vrcp.f32 %v2539_v25  ;;  %v2547_v29 = vpop.xlane.xlu0 %1019  ;;  %v1126_v35 = vmul.f32 %v1887_v26, %v2506_v57  ;;  %v1889_v36 = vpop.eup %1888  ;;  %v1124_v37 = vsel %vm2515_vm10, %v1123_v15, %v1119_v20  ;;  %vm1034_vm7 = vmor %vm1032_vm14, %vm1033_vm3 }
 0x24a   :  { %v1029_v30 = vsub.f32 1.0, %v1028_v23  ;;  %1892 = vrcp.f32 %v2547_v29  ;;  %v1082_v41 = vsel %vm2526_vm12, %v1081_v22, %v1077_v28  ;;  %v1042_v43 = vmul.f32 %v1889_v36, %v2511_v60  ;;  %v1333_v23 = vld [vmem:[%s2745_s7 + $0x10] sm:$0xff]  ;;  %v1338_v28 = vld [vmem:[%s2745_s7 + $0x38] sm:$0xff] }
 0x24b   :  { %v1127_v42 = vsub.f32 1.0, %v1126_v35  ;;  %vm1131_vm6 = vweird.f32 %v1887_v26  ;;  %vm1047_vm8 = vweird.f32 %v1889_v36  ;;  %v1142_v52 = vmul.f32 %v2474_v27, %v1082_v41  ;;  %1403 = vmatpush.msrb.mxu2 %v1333_v23  ;;  %v1611_v23 = vld [vmem:[%s2749_s11 + $0x18] sm:$0xff] }
 0x24c   :  { %v1030_v16 = vmul.f32 %v1885_v12, %v1029_v30  ;;  %v1043_v49 = vsub.f32 1.0, %v1042_v43  ;;  %v1145_v53 = vmul.f32 %v2472_v24, %v1124_v37  ;;  %vm1132_vm9 = vmor %vm1130_vm15, %vm1131_vm6  ;;  %vm2578_vm10 = vcmp.eq.f32.partialorder %v1050_v45, 8.507059e+37 }
 0x24d   :  { %v1128_v48 = vmul.f32 %v1887_v26, %v1127_v42  ;;  %vm1088_vm11 = vweird.f32 %v2539_v25  ;;  %1810 = vmatmul.msk.f32.vlgmr.msrb.gmra.mxu3 %vm738_vm1, %v1142_v52  ;;  %vm1048_vm12 = vmor %vm1046_vm5, %vm1047_vm8  ;;  %v1092_v2 = vand.u32 2147483647, %v2539_v25  ;;  %v1094_v3 = vand.u32 2147483648, %v2539_v25 }
 0x24e   :  { %v1031_v47 = vadd.f32 %v1885_v12, %v1030_v16  ;;  %v1044_v58 = vmul.f32 %v1889_v36, %v1043_v49  ;;  %1813 = vmatmul.msk.f32.vlgmr.msra.gmra.mxu2 %vm738_vm1, %v1145_v53  ;;  %v1106_v9 = vand.u32 2147483647, %v2547_v29  ;;  %v1108_v10 = vand.u32 2147483648, %v2547_v29 }
 0x24f   :  { %v1891_v50 = vpop.eup %1890  ;;  %v1129_v55 = vadd.f32 %v1887_v26, %v1128_v48  ;;  %v1095_v15 = vor.u32 1.1754944e-38, %v1094_v3  ;;  %vm1102_vm3 = vweird.f32 %v2547_v29 }
 0x250   :  { %v1035_v54 = vsel %vm1034_vm7, %v1885_v12, %v1031_v47  ;;  %v1084_v59 = vmul.f32 %v1891_v50, %v2539_v25  ;;  %v1893_v61 = vpop.eup %1892  ;;  %v1045_v27 = vadd.f32 %v1889_v36, %v1044_v58  ;;  %vm1089_vm13 = vweird.f32 %v1891_v50  ;;  %v1334_v25 = vld [vmem:[%s2745_s7 + $0x18] sm:$0xff] }
 0x251   :  { %v1040_v62 = vsel %vm2549_vm2, %v1039_v14, %v1035_v54  ;;  %v1133_v24 = vsel %vm1132_vm9, %v1887_v26, %v1129_v55  ;;  %v1098_v1 = vmul.f32 %v1893_v61, %v2547_v29  ;;  %vm1103_vm14 = vweird.f32 %v1893_v61  ;;  %vm1090_vm15 = vmor %vm1088_vm11, %vm1089_vm13  ;;  %1426 = vmatpush.msrb.mxu3 %v1334_v25  ;;  %v1337_v26 = vld [vmem:[%s2745_s7 + $0x30] sm:$0xff]  ;;  %v1336_v29 = vld [vmem:[%s2745_s7 + $0x28] sm:$0xff] }
 0x252   :  { %v1085_v0 = vsub.f32 1.0, %v1084_v59  ;;  %v1138_v57 = vsel %vm2561_vm4, %v1137_v51, %v1133_v24  ;;  %v1139_v4 = vmul.f32 %v2484_v34, %v1040_v62  ;;  %v1049_v5 = vsel %vm1048_vm12, %v1889_v36, %v1045_v27  ;;  %vm1104_vm4 = vmor %vm1102_vm3, %vm1103_vm14  ;;  %1495 = vmatpush.msra.mxu2 %v1337_v26  ;;  %v1610_v25 = vld [vmem:[%s2749_s11 + $0x10] sm:$0xff] }
 0x253   :  { %v1099_v7 = vsub.f32 1.0, %v1098_v1  ;;  %v1054_v8 = vsel %vm2578_vm10, %v1053_v63, %v1049_v5  ;;  %v1146_v60 = vmul.f32 %v2480_v32, %v1138_v57  ;;  %vm1093_vm2 = vcmp.eq.f32.partialorder %v1092_v2, 8.507059e+37  ;;  %v1904_v63 = vld [vmem:[%s2761_s27] sm:$0xff] }
 0x254   :  { %v1086_v6 = vmul.f32 %v1891_v50, %v1085_v0  ;;  %1807 = vmatmul.msk.f32.vlgmr.msrb.gmra.mxu0 %vm738_vm1, %v1139_v4  ;;  %v1140_v34 = vmul.f32 %v2482_v33, %v1054_v8  ;;  %v1109_v20 = vor.u32 1.1754944e-38, %v1108_v10  ;;  %vm1107_vm5 = vcmp.eq.f32.partialorder %v1106_v9, 8.507059e+37  ;;  %v1905_v4 = vld [vmem:[%s2761_s27 + $0x8] sm:$0xff] }
 0x255   :  { %v1100_v13 = vmul.f32 %v1893_v61, %v1099_v7  ;;  %1814 = vmatmul.msk.f32.vlgmr.msra.gmra.mxu3 %vm738_vm1, %v1146_v60  ;;  %v1932_v7 = vmov 32.0   ;;  %vm1659_vm12 = vcmask 523264  }
 0x256   :  { %v1087_v12 = vadd.f32 %v1891_v50, %v1086_v6  ;;  %1808 = vmatmul.msk.f32.vlgmr.msrb.gmra.mxu1 %vm738_vm1, %v1140_v34  ;;  %1518 = vmatpush.msra.mxu3 %v1338_v28  ;;  %1894 = vrcp.f32 %v1932_v7  ;;  %v1859_v7 = vld [vmem:[%s2752_s14] ss:$0 sm:$0xff] }
 0x257   :  { %v1101_v18 = vadd.f32 %v1893_v61, %v1100_v13 }
 0x258   :  { %v1091_v17 = vsel %vm1090_vm15, %v1891_v50, %v1087_v12  ;;  %v1855_v50 = vld [vmem:[%s2746_s8] ss:$0 sm:$0xff] }
 0x259   :  { %v1096_v19 = vsel %vm1093_vm2, %v1095_v15, %v1091_v17  ;;  %v1105_v32 = vsel %vm1104_vm4, %v1893_v61, %v1101_v18 }
 0x25a   :  { %v1143_v33 = vmul.f32 %v2492_v39, %v1096_v19  ;;  %v1110_v21 = vsel %vm1107_vm5, %v1109_v20, %v1105_v32  ;;  %v1331_v39 = vld [vmem:[%s2745_s7] sm:$0xff] }
 0x25b   :  { %v1144_v22 = vmul.f32 %v2494_v40, %v1110_v21  ;;  %v1332_v40 = vld [vmem:[%s2745_s7 + $0x8] sm:$0xff]  ;;  %1357 = vmatpush.msrb.mxu0 %v1331_v39 }
 0x25c   :  { %1811 = vmatmul.msk.f32.vlgmr.msra.gmra.mxu0 %vm738_vm1, %v1143_v33  ;;  %1380 = vmatpush.msrb.mxu1 %v1332_v40  ;;  %v1895_v8 = vpop.eup %1894  ;;  %v1609_v39 = vld [vmem:[%s2749_s11 + $0x8] sm:$0xff]  ;;  %v1608_v40 = vld [vmem:[%s2749_s11] sm:$0xff] }
 0x25d   :  { %1449 = vmatpush.msra.mxu0 %v1335_v11  ;;  %v1554_v9 = vmul.f32 32.0, %v1895_v8 }
 0x25e   :  { %1812 = vmatmul.msk.f32.vlgmr.msra.gmra.mxu1 %vm738_vm1, %v1144_v22 }
 0x25f   :  { %1472 = vmatpush.msra.mxu1 %v1336_v29  ;;  %v1555_v10 = vsub.f32 1.0, %v1554_v9  ;;  %v1654_v29 = vld [vmem:[%s2751_s13 + $0x38] sm:$0xff] }
 0x261   :  { %v1556_v60 = vmul.f32 %v1895_v8, %v1555_v10 }
 0x263   :  { %v1557_v12 = vadd.f32 %v1895_v8, %v1556_v60 }
 0x2c8   :  { %v1213_v30 = vpop.f32.mrf.mxu2 }
 0x2c9   :  { %1817 = vmatmul.msk.f32.vlgmr.msrb.gmra.mxu2 %vm738_vm1, %v1213_v30  ;;  %v1653_v30 = vld [vmem:[%s2751_s13 + $0x30] sm:$0xff] }
 0x2d0   :  { %v1236_v14 = vpop.f32.mrf.mxu3 }
 0x2d1   :  { %v1167_v31 = vpop.f32.mrf.mxu0  ;;  %v1305_v35 = vpop.f32.mrf.mxu2  ;;  %1818 = vmatmul.msk.f32.vlgmr.msrb.gmra.mxu3 %vm738_vm1, %v1236_v14 }
 0x2d2   :  { %1815 = vmatmul.msk.f32.vlgmr.msrb.gmra.mxu0 %vm738_vm1, %v1167_v31  ;;  %1821 = vmatmul.msk.f32.vlgmr.msra.gmra.mxu2 %vm738_vm1, %v1305_v35  ;;  %v1652_v31 = vld [vmem:[%s2751_s13 + $0x28] sm:$0xff] }
 0x2d3   :  { %v1190_v36 = vpop.f32.mrf.mxu1  ;;  %1634 = vmatpush.msrb.mxu0 %v1611_v23 }
 0x2d4   :  { %1816 = vmatmul.msk.f32.vlgmr.msrb.gmra.mxu1 %vm738_vm1, %v1190_v36  ;;  %v1651_v36 = vld [vmem:[%s2751_s13 + $0x20] sm:$0xff] }
 0x2d5   :  { %1635 = vmatpush.msrb.mxu0 %v1610_v25  ;;  %1674 = vmatpush.msrb.mxu1 %v1654_v29 }
 0x2d7   :  { %1636 = vmatpush.msrb.mxu0 %v1609_v39  ;;  %1675 = vmatpush.msrb.mxu1 %v1653_v30 }
 0x2d8   :  { %v1328_v38 = vpop.f32.mrf.mxu3 }
 0x2d9   :  { %v1259_v37 = vpop.f32.mrf.mxu0  ;;  %1822 = vmatmul.msk.f32.vlgmr.msra.gmra.mxu3 %vm738_vm1, %v1328_v38  ;;  %1637 = vmatpush.msrb.mxu0 %v1608_v40 }
 0x2da   :  { %1819 = vmatmul.msk.f32.vlgmr.msra.gmra.mxu0 %vm738_vm1, %v1259_v37  ;;  %1676 = vmatpush.msrb.mxu1 %v1652_v31 }
 0x2db   :  { %v1282_v41 = vpop.f32.mrf.mxu1 }
 0x2dc   :  { %1820 = vmatmul.msk.f32.vlgmr.msra.gmra.mxu1 %vm738_vm1, %v1282_v41  ;;  %vm1558_vm1 = vweird.f32 %v1895_v8  ;;  %v1650_v41 = vld [vmem:[%s2751_s13 + $0x18] sm:$0xff] }
 0x2dd   :  { %v2661_v13 = vsel %vm1558_vm1, %v1895_v8, %v1557_v12  ;;  %1677 = vmatpush.msrb.mxu1 %v1651_v36 }
 0x2df   :  { %1678 = vmatpush.msrb.mxu1 %v1650_v41 }
 0x34c   :  { %v1405_v42 = vpop.f32.mrf.mxu2 }
 0x34d   :  { %v1526_v47 = vsel %vm123_vm0, %v1405_v42, 0.0 }
 0x34f   :  { %v1359_v16 = vpop.f32.mrf.mxu0 }
 0x350   :  { %v1523_v43 = vsel %vm123_vm0, %v1359_v16, 0.0 }
 0x351   :  { %v1382_v44 = vpop.f32.mrf.mxu1 }
 0x352   :  { %v1524_v45 = vsel %vm123_vm0, %v1382_v44, 0.0 }
 0x353   :  { %v1525_v46 = vadd.f32 %v1524_v45, %v1523_v43 }
 0x354   :  { %v1428_v49 = vpop.f32.mrf.mxu3 }
 0x355   :  { %v1527_v48 = vadd.f32 %v1526_v47, %v1525_v46  ;;  %v1528_v51 = vsel %vm123_vm0, %v1428_v49, 0.0  ;;  %v1497_v55 = vpop.f32.mrf.mxu2 }
 0x356   :  { %v1533_v56 = vsel %vm123_vm0, %v1497_v55, 0.0 }
 0x357   :  { %v1451_v52 = vpop.f32.mrf.mxu0  ;;  %v1529_v53 = vadd.f32 %v1528_v51, %v1527_v48  ;;  %v1856_v48 = vld [vmem:[%s2747_s9] ss:$0 sm:$0xff] }
 0x358   :  { %v1530_v54 = vsel %vm123_vm0, %v1451_v52, 0.0  ;;  %v1857_v52 = vld [vmem:[%s2748_s10] ss:$0 sm:$0xff] }
 0x359   :  { %v1474_v58 = vpop.f32.mrf.mxu1  ;;  %v1541_v59 = vadd.f32 %v1855_v50, %v1529_v53 }
 0x35a   :  { %v1531_v61 = vsel %vm123_vm0, %v1474_v58, 0.0 }
 0x35b   :  { %v1532_v62 = vadd.f32 %v1531_v61, %v1530_v54  ;;  %v1543_v24 = vadd.f32 %v1904_v63, %v1541_v59 }
 0x35c   :  { %v1520_v0 = vpop.f32.mrf.mxu3 }
 0x35d   :  { %v1534_v27 = vadd.f32 %v1533_v56, %v1532_v62  ;;  %v1547_v1 = vsel %vm123_vm0, %v1543_v24, 0.0  ;;  %v1535_v57 = vsel %vm123_vm0, %v1520_v0, 0.0  ;;  %v1647_v0 = vld [vmem:[%s2751_s13] sm:$0xff] }
 0x35e   :  { %1548 = vadd.xlane.f32.xlu1 %v1547_v1  ;;  %v1858_v1 = vld [vmem:[%s2750_s12] ss:$0 sm:$0xff] }
 0x35f   :  { %v1536_v2 = vadd.f32 %v1535_v57, %v1534_v27  ;;  %v1648_v27 = vld [vmem:[%s2751_s13 + $0x8] sm:$0xff] }
 0x361   :  { %v1542_v3 = vadd.f32 %v1855_v50, %v1536_v2 }
 0x363   :  { %v1544_v5 = vadd.f32 %v1905_v4, %v1542_v3 }
 0x365   :  { %v1550_v6 = vsel %vm123_vm0, %v1544_v5, 0.0 }
 0x366   :  { %1551 = vadd.xlane.f32.xlu2 %v1550_v6 }
 0x3d1   :  { %v1549_v34 = vpop.xlane.xlu1 %1548 }
 0x3d2   :  { %v1560_v15 = vmul.f32 %v2661_v13, %v1549_v34 }
 0x3d4   :  { %v1562_v17 = vsub.f32 %v1543_v24, %v1560_v15  ;;  %v1649_v24 = vld [vmem:[%s2751_s13 + $0x10] sm:$0xff] }
 0x3d5   :  { %1679 = vmatpush.msrb.mxu1 %v1649_v24 }
 0x3d6   :  { %v1564_v18 = vmul.f32 %v1562_v17, %v1562_v17 }
 0x3d7   :  { %1680 = vmatpush.msrb.mxu1 %v1648_v27 }
 0x3d8   :  { %v1566_v19 = vsel %vm123_vm0, %v1564_v18, 0.0 }
 0x3d9   :  { %1567 = vadd.xlane.f32.xlu0 %v1566_v19  ;;  %v1552_v20 = vpop.xlane.xlu2 %1551  ;;  %1681 = vmatpush.msrb.mxu1 %v1647_v0 }
 0x3da   :  { %v1561_v32 = vmul.f32 %v2661_v13, %v1552_v20 }
 0x3dc   :  { %v1563_v33 = vsub.f32 %v1544_v5, %v1561_v32 }
 0x3de   :  { %v1565_v21 = vmul.f32 %v1563_v33, %v1563_v33 }
 0x3e0   :  { %v1569_v22 = vsel %vm123_vm0, %v1565_v21, 0.0 }
 0x3e1   :  { %1570 = vadd.xlane.f32.xlu1 %v1569_v22 }
 0x44c   :  { %v1568_v26 = vpop.xlane.xlu0 %1567 }
 0x44d   :  { %v1572_v28 = vmul.f32 %v1568_v26, %v2661_v13 }
 0x44f   :  { %v1574_v11 = vadd.f32 1e-05, %v1572_v28 }
 0x451   :  { %1896 = vrsqrt.f32 %v1574_v11  ;;  %vm1582_vm7 = vweird.f32 %v1574_v11 }
 0x454   :  { %v1571_v14 = vpop.xlane.xlu1 %1570 }
 0x455   :  { %v1573_v35 = vmul.f32 %v1571_v14, %v2661_v13 }
 0x457   :  { %v1897_v37 = vpop.eup %1896  ;;  %v1575_v38 = vadd.f32 1e-05, %v1573_v35 }
 0x458   :  { %v1577_v16 = vmul.f32 %v1897_v37, %v1574_v11  ;;  %vm1583_vm6 = vweird.f32 %v1897_v37 }
 0x459   :  { %1898 = vrsqrt.f32 %v1575_v38  ;;  %vm1584_vm8 = vmor %vm1582_vm7, %vm1583_vm6  ;;  %vm1592_vm10 = vweird.f32 %v1575_v38 }
 0x45a   :  { %v1578_v42 = vmul.f32 %v1897_v37, %v1577_v16 }
 0x45c   :  { %v1579_v43 = vmul.f32 0.5, %v1578_v42  ;;  %v1860_v42 = vld [vmem:[%s2753_s15] ss:$0 sm:$0xff]  ;;  %s1933_s15 = smov [#allocation2]  }
 0x45d   :  { %s1753_s5 = sshll.u32 %s1933_s15, 4  ;;  %s1754_s5 = int_to_ptr.vmem [resolvable:$true] %s1753_s5 }
 0x45e   :  { %v1580_v44 = vsub.f32 1.5, %v1579_v43 }
 0x45f   :  { %v1899_v45 = vpop.eup %1898 }
 0x460   :  { %v1581_v46 = vmul.f32 %v1897_v37, %v1580_v44  ;;  %v1587_v47 = vmul.f32 %v1899_v45, %v1575_v38  ;;  %vm1593_vm9 = vweird.f32 %v1899_v45 }
 0x461   :  { %vm1594_vm11 = vmor %vm1592_vm10, %vm1593_vm9 }
 0x462   :  { %v1585_v49 = vsel %vm1584_vm8, %v1897_v37, %v1581_v46  ;;  %v1588_v50 = vmul.f32 %v1899_v45, %v1587_v47 }
 0x463   :  { %v1596_v51 = vmul.f32 %v1585_v49, %v1562_v17 }
 0x464   :  { %v1589_v53 = vmul.f32 0.5, %v1588_v50 }
 0x465   :  { %v1601_v54 = vmul.f32 %v1856_v48, %v1596_v51 }
 0x466   :  { %v1590_v55 = vsub.f32 1.5, %v1589_v53 }
 0x467   :  { %v1606_v58 = vadd.f32 %v1857_v52, %v1601_v54 }
 0x468   :  { %v1591_v59 = vmul.f32 %v1899_v45, %v1590_v55 }
 0x469   :  { %1823 = vmatmul.msk.f32.vlgmr.msrb.gmra.mxu0 %vm123_vm0, %v1606_v58 }
 0x46a   :  { %v1595_v61 = vsel %vm1594_vm11, %v1899_v45, %v1591_v59  ;;  %v1861_v45 = vld [vmem:[%s2754_s16] ss:$0 sm:$0xff]  ;;  %s1934_s16 = smov 128  }
 0x46b   :  { %v1597_v62 = vmul.f32 %v1595_v61, %v1563_v33 }
 0x46d   :  { %v1602_v56 = vmul.f32 %v1856_v48, %v1597_v62 }
 0x46f   :  { %v1607_v63 = vadd.f32 %v1857_v52, %v1602_v56 }
 0x471   :  { %1824 = vmatmul.msk.f32.gmra.mxu0 %vm123_vm0, %v1607_v63 }
 0x4e6   :  { %v1639_v57 = vpop.f32.mrf.mxu0 }
 0x4e7   :  { %v1640_v2 = vadd.f32 %v1858_v1, %v1639_v57 }
 0x4e9   :  { %v1645_v3 = vmax.f32 %v1640_v2, 0.0 }
 0x4eb   :  { %1825 = vmatmul.msk.f32.vlgmr.msrb.gmra.mxu1 %vm1659_vm12, %v1645_v3 }
 0x4ee   :  { %v1642_v4 = vpop.f32.mrf.mxu0 }
 0x4ef   :  { %v1643_v5 = vadd.f32 %v1858_v1, %v1642_v4 }
 0x4f1   :  { %v1646_v6 = vmax.f32 %v1643_v5, 0.0 }
 0x4f3   :  { %1826 = vmatmul.msk.f32.gmra.mxu1 %vm1659_vm12, %v1646_v6 }
 0x568   :  { %v1683_v8 = vpop.f32.mrf.mxu1 }
 0x569   :  { %v1684_v9 = vadd.f32 %v1859_v7, %v1683_v8 }
 0x56b   :  { %v1689_v10 = vadd.f32 %v1684_v9, %v1606_v58 }
 0x56d   :  { %v1693_v60 = vsel %vm123_vm0, %v1689_v10, 0.0 }
 0x56e   :  { %1694 = vadd.xlane.f32.xlu2 %v1693_v60 }
 0x570   :  { %v1686_v12 = vpop.f32.mrf.mxu1 }
 0x571   :  { %v1687_v34 = vadd.f32 %v1859_v7, %v1686_v12 }
 0x573   :  { %v1690_v15 = vadd.f32 %v1687_v34, %v1607_v63 }
 0x575   :  { %v1696_v17 = vsel %vm123_vm0, %v1690_v15, 0.0 }
 0x576   :  { %1697 = vadd.xlane.f32.xlu0 %v1696_v17 }
 0x5e1   :  { %v1695_v18 = vpop.xlane.xlu2 %1694 }
 0x5e2   :  { %v1699_v19 = vmul.f32 %v1695_v18, %v2661_v13 }
 0x5e4   :  { %v1701_v20 = vsub.f32 %v1689_v10, %v1699_v19 }
 0x5e6   :  { %v1703_v32 = vmul.f32 %v1701_v20, %v1701_v20 }
 0x5e8   :  { %v1705_v33 = vsel %vm123_vm0, %v1703_v32, 0.0 }
 0x5e9   :  { %v1698_v21 = vpop.xlane.xlu0 %1697  ;;  %1706 = vadd.xlane.f32.xlu1 %v1705_v33 }
 0x5ea   :  { %v1700_v22 = vmul.f32 %v1698_v21, %v2661_v13 }
 0x5ec   :  { %v1702_v23 = vsub.f32 %v1690_v15, %v1700_v22 }
 0x5ee   :  { %v1704_v25 = vmul.f32 %v1702_v23, %v1702_v23 }
 0x5f0   :  { %v1708_v39 = vsel %vm123_vm0, %v1704_v25, 0.0 }
 0x5f1   :  { %1709 = vadd.xlane.f32.xlu2 %v1708_v39 }
 0x65c   :  { %v1707_v40 = vpop.xlane.xlu1 %1706 }
 0x65d   :  { %v1711_v26 = vmul.f32 %v1707_v40, %v2661_v13 }
 0x65f   :  { %v1713_v28 = vadd.f32 1e-05, %v1711_v26 }
 0x661   :  { %1900 = vrsqrt.f32 %v1713_v28  ;;  %vm1721_vm14 = vweird.f32 %v1713_v28 }
 0x664   :  { %v1710_v11 = vpop.xlane.xlu2 %1709 }
 0x665   :  { %v1712_v29 = vmul.f32 %v1710_v11, %v2661_v13 }
 0x667   :  { %v1901_v30 = vpop.eup %1900  ;;  %v1714_v31 = vadd.f32 1e-05, %v1712_v29 }
 0x668   :  { %v1716_v14 = vmul.f32 %v1901_v30, %v1713_v28  ;;  %vm1722_vm13 = vweird.f32 %v1901_v30 }
 0x669   :  { %1902 = vrsqrt.f32 %v1714_v31  ;;  %vm1723_vm15 = vmor %vm1721_vm14, %vm1722_vm13  ;;  %vm1731_vm3 = vweird.f32 %v1714_v31 }
 0x66a   :  { %v1717_v35 = vmul.f32 %v1901_v30, %v1716_v14 }
 0x66c   :  { %v1718_v36 = vmul.f32 0.5, %v1717_v35 }
 0x66e   :  { %v1719_v37 = vsub.f32 1.5, %v1718_v36 }
 0x66f   :  { %v1903_v38 = vpop.eup %1902 }
 0x670   :  { %v1720_v41 = vmul.f32 %v1901_v30, %v1719_v37  ;;  %v1726_v16 = vmul.f32 %v1903_v38, %v1714_v31  ;;  %vm1732_vm2 = vweird.f32 %v1903_v38 }
 0x671   :  { %vm1733_vm4 = vmor %vm1731_vm3, %vm1732_vm2 }
 0x672   :  { %v1724_v43 = vsel %vm1723_vm15, %v1901_v30, %v1720_v41  ;;  %v1727_v44 = vmul.f32 %v1903_v38, %v1726_v16 }
 0x673   :  { %v1735_v13 = vmul.f32 %v1724_v43, %v1701_v20 }
 0x674   :  { %v1728_v46 = vmul.f32 0.5, %v1727_v44 }
 0x675   :  { %v1740_v47 = vmul.f32 %v1860_v42, %v1735_v13 }
 0x676   :  { %v1729_v48 = vsub.f32 1.5, %v1728_v46 }
 0x677   :  { %v1745_v49 = vadd.f32 %v1861_v45, %v1740_v47 }
 0x678   :  { %v1730_v50 = vmul.f32 %v1903_v38, %v1729_v48 }
 0x679   :  { %1747 = vst.msk [vmem:[#allocation2] sm:$0xff] %vm123_vm0, %v1745_v49 }
 0x67a   :  { %v1734_v51 = vsel %vm1733_vm4, %v1903_v38, %v1730_v50 }
 0x67b   :  { %v1736_v52 = vmul.f32 %v1734_v51, %v1702_v23 }
 0x67d   :  { %v1741_v53 = vmul.f32 %v1860_v42, %v1736_v52 }
 0x67f   :  { %v1746_v54 = vadd.f32 %v1861_v45, %v1741_v53 }
 0x681   :  { %1748 = vst.msk [vmem:[#allocation2 + $0x8] sm:$0xff] %vm123_vm0, %v1746_v54 }
 0x682   :  { %1761 = dma.vmem_to_hbm [thread:$0]  %s1754_s5, 256, %s1756_s30, [#allocation3], %s1934_s16, %s1934_s16, %s1935_s18  }
 0x683   :  { %1930 = dma.done.wait [#allocation3], 256  }
 0x684   :  { %1931 = vsyncadd [#allocation3], 4294967040 }
 0x685   :  { %1766 = vsyncpa [#allocation3], 1 }

</bundles_post_ra>
